<compile_context>
chip_gen: v7x
topology: tpu7x:2x2x1
jax: 0.10.0
libtpu: 0.0.40
codegen_flags: <defaults>
</compile_context>

<pallas_src>
import functools

import jax
import jax.numpy as jnp
from jax.experimental import pallas as pl
from jax.experimental.pallas import tpu as pltpu

LANE = 128


# ---------------------------------------------------------------------------
# Fused whole-model kernel
# ---------------------------------------------------------------------------
def _tcn_kernel(*refs, meta, T, Bblk):
    """Entire TCN forward for one (Bblk*T, C) batch block, fully fused.

    refs = [x_ref,
            (w1, b1, w2, b2[, wd, bd]) for every block...,
            wf, bf,
            o_ref]
    """
    M = Bblk * T
    it = iter(refs)
    x_ref = next(it)
    per_block = []
    for blk in meta:
        w1 = next(it); b1 = next(it); w2 = next(it); b2 = next(it)
        wd = bd = None
        if blk["has_down"]:
            wd = next(it); bd = next(it)
        per_block.append((w1, b1, w2, b2, wd, bd))
    wf_ref = next(it); bf_ref = next(it)
    o_ref = next(it)

    # --- hoisted per-shape iotas/masks (reused across taps, convs, blocks) ---
    iota_cache = {}
    mask_cache = {}

    def tap_mask(C, s):
        # True where the local time index (row % T) >= s, i.e. a causal shift by
        # s stays inside the same batch segment of the folded (Bblk*T, C) tile.
        if (C, s) not in mask_cache:
            if C not in iota_cache:
                row = jax.lax.broadcasted_iota(jnp.int32, (M, C), 0)
                iota_cache[C] = row % T
            mask_cache[(C, s)] = iota_cache[C] >= s
        return mask_cache[(C, s)]

    def gather_taps(h, K, d):
        """h: (M, C).  Returns (M, K*C) bf16 where lane block k holds
        h[t - (K-1-k)*d] within each batch segment (zeros where shifted index
        is negative).  Roll/mask in f32 (safe sublane rotate); each tap is cast
        to bf16 before the lane-concat so the gathered tile is half width."""
        C = h.shape[1]
        hf = h if h.dtype == jnp.float32 else h.astype(jnp.float32)
        parts = []
        for k in range(K):                      # K tiny & static -> unrolled
            s = (K - 1 - k) * d
            if s == 0:
                parts.append(h if h.dtype == jnp.bfloat16
                             else h.astype(jnp.bfloat16))
            elif s >= T:
                parts.append(jnp.zeros((M, C), jnp.bfloat16))
            else:
                rolled = pltpu.roll(hf, shift=s, axis=0)        # XLU, cheap
                masked = jnp.where(tap_mask(C, s), rolled,
                                   jnp.zeros_like(rolled))
                parts.append(masked.astype(jnp.bfloat16))
        return parts[0] if K == 1 else jnp.concatenate(parts, axis=1)

    def conv_relu(h, w_ref, b_ref, K, d):
        g = gather_taps(h, K, d)                               # (M, K*C) bf16
        acc = jnp.dot(g, w_ref[...], preferred_element_type=jnp.float32)
        return jnp.maximum(acc + b_ref[...], 0.0)              # (M, Cout) f32

    def last_rows(h):
        # Rows at the final timestep (t = T-1) of every batch segment.
        parts = [h[b * T + T - 1: b * T + T, :] for b in range(Bblk)]
        return parts[0] if Bblk == 1 else jnp.concatenate(parts, axis=0)

    def last_taps(h, K, d):
        # (Bblk, K*C) bf16 gathered conv input at the final timestep only.
        C = h.shape[1]
        rows = []
        for b in range(Bblk):
            parts = []
            for k in range(K):
                t = T - 1 - (K - 1 - k) * d
                if t < 0:
                    parts.append(jnp.zeros((1, C), jnp.bfloat16))
                else:
                    parts.append(h[b * T + t: b * T + t + 1, :]
                                 .astype(jnp.bfloat16))
            rows.append(parts[0] if K == 1 else jnp.concatenate(parts, axis=1))
        return rows[0] if Bblk == 1 else jnp.concatenate(rows, axis=0)

    # --- block stack, entirely in VMEM/vregs (never written to HBM) ---
    hb = x_ref[...]                                            # (M, Cin0) bf16
    n_blocks = len(meta)
    for bi, blk in enumerate(meta):
        w1, b1, w2, b2, wd, bd = per_block[bi]
        K, d = blk["K"], blk["d"]
        is_last = bi == n_blocks - 1

        h1 = conv_relu(hb, w1, b1, K, d)                       # (M, Cout) f32

        if not is_last:
            h2 = conv_relu(h1, w2, b2, K, d)                   # (M, Cout) f32
            if blk["has_down"]:
                res = jnp.dot(hb, wd[...],
                              preferred_element_type=jnp.float32) + bd[...]
            else:
                res = hb.astype(jnp.float32)   # identity residual: no matmul
            hb = jnp.maximum(h2 + res, 0.0).astype(jnp.bfloat16)
        else:
            # Only timestep T-1 feeds the fc: restrict conv2 / residual / ReLU
            # / fc to the final timestep's rows (Bblk rows, not Bblk*T rows).
            g2 = last_taps(h1, K, d)                           # (Bblk, K*Cout)
            h2 = jnp.maximum(
                jnp.dot(g2, w2[...], preferred_element_type=jnp.float32)
                + b2[...], 0.0)                                # (Bblk, Cout)
            xl = last_rows(hb)                                 # (Bblk, Cin) bf16
            if blk["has_down"]:
                res = jnp.dot(xl, wd[...],
                              preferred_element_type=jnp.float32) + bd[...]
            else:
                res = xl.astype(jnp.float32)
            outl = jnp.maximum(h2 + res, 0.0)                  # (Bblk, Cout) f32
            y = jnp.dot(outl.astype(jnp.bfloat16), wf_ref[...],
                        preferred_element_type=jnp.float32) + bf_ref[...]
            o_ref[...] = y.reshape(Bblk, 1, y.shape[1])        # (Bblk, 1, O_p)


# ---------------------------------------------------------------------------
# Wrapper
# ---------------------------------------------------------------------------
def _pick_bblk(B, T, max_rows=512):
    """Largest divisor of B with Bblk*T <= max_rows: fold batch into the MXU M
    axis (target M ~ 256-512) while keeping the per-step working set small."""
    best = 1
    for cand in range(1, B + 1):
        if B % cand == 0 and cand * T <= max_rows:
            best = cand
    return best


def tcn_forward(x, blocks, fc, output_size):
    """x: (B, T, input_size) f32 (same argument as the PyTorch forward, which
    transposes to NCL internally).  Returns (B, output_size) f32."""
    B, T, cin = x.shape
    cin_p = blocks[0]["cin_p"]
    wf, bf = fc
    o_p = wf.shape[1]

    # Lane-pad channels once; flatten batch x time on the host (major-dim merge).
    h = jnp.pad(x, ((0, 0), (0, 0), (0, cin_p - cin))).astype(jnp.bfloat16)
    h = h.reshape(B * T, cin_p)

    Bblk = _pick_bblk(B, T)
    grid = (B // Bblk,)
    assert (Bblk * T) % 8 == 0 or B // Bblk == 1, \
        "keep T a multiple of 8 (sublane tile) when the batch grid is > 1"

    args = [h]
    in_specs = [pl.BlockSpec((Bblk * T, cin_p), lambda i: (i, 0))]
    meta = []
    for p in blocks:
        has_down = p["wd"] is not None
        args += [p["w1f"], p["b1"], p["w2f"], p["b2"]]
        in_specs += [pl.BlockSpec(p["w1f"].shape, lambda i: (0, 0)),
                     pl.BlockSpec(p["b1"].shape, lambda i: (0, 0)),
                     pl.BlockSpec(p["w2f"].shape, lambda i: (0, 0)),
                     pl.BlockSpec(p["b2"].shape, lambda i: (0, 0))]
        if has_down:
            args += [p["wd"], p["bd"]]
            in_specs += [pl.BlockSpec(p["wd"].shape, lambda i: (0, 0)),
                         pl.BlockSpec(p["bd"].shape, lambda i: (0, 0))]
        meta.append(dict(K=p["K"], d=p["dilation"], has_down=has_down))
    args += [wf, bf]
    in_specs += [pl.BlockSpec(wf.shape, lambda i: (0, 0)),
                 pl.BlockSpec(bf.shape, lambda i: (0, 0))]

    kernel = functools.partial(_tcn_kernel, meta=tuple(meta), T=T, Bblk=Bblk)
    y = pl.pallas_call(
        kernel,
        out_shape=jax.ShapeDtypeStruct((B, 1, o_p), jnp.float32),
        grid=grid,
        in_specs=in_specs,
        out_specs=pl.BlockSpec((Bblk, 1, o_p), lambda i: (i, 0, 0)),
        compiler_params=pltpu.CompilerParams(
            dimension_semantics=("parallel",)),
    )(*args)
    return y[:, 0, :output_size]


# ---------------------------------------------------------------------------
# Parameter init (deterministic, synthetic) in the packed/lane-padded layout
# ---------------------------------------------------------------------------
def _rpad(n):
    return ((n + LANE - 1) // LANE) * LANE


def _pack_conv_weight(w, cin_p, cout_p):
    # w: (K, cin, cout) -> zero-pad channels, flatten taps into the contraction
    # dim: (K*cin_p, cout_p) bf16 -- matches the kernel's gathered tile.
    K, cin, cout = w.shape
    wp = jnp.pad(w, ((0, 0), (0, cin_p - cin), (0, cout_p - cout)))
    return wp.reshape(K * cin_p, cout_p).astype(jnp.bfloat16)


def _pad_matrix(w, r_p, c_p):
    r, c = w.shape
    return jnp.pad(w, ((0, r_p - r), (0, c_p - c))).astype(jnp.bfloat16)


def _pad_bias(b, c_p):
    return jnp.pad(b, (0, c_p - b.shape[0])).reshape(1, c_p).astype(jnp.float32)


def init_tcn_params(key, input_size, output_size, num_channels, kernel_size):
    blocks = []
    in_c = input_size
    for i, out_c in enumerate(num_channels):
        key, k1, k2, k3, k4, k5, k6 = jax.random.split(key, 7)
        cin_p, cout_p = _rpad(in_c), _rpad(out_c)
        w1 = 0.1 * jax.random.normal(k1, (kernel_size, in_c, out_c), jnp.float32)
        b1 = 0.1 * jax.random.normal(k2, (out_c,), jnp.float32)
        w2 = 0.1 * jax.random.normal(k3, (kernel_size, out_c, out_c), jnp.float32)
        b2 = 0.1 * jax.random.normal(k4, (out_c,), jnp.float32)
        if in_c != out_c:
            wd = 0.1 * jax.random.normal(k5, (in_c, out_c), jnp.float32)
            bd = 0.1 * jax.random.normal(k6, (out_c,), jnp.float32)
            wdp, bdp = _pad_matrix(wd, cin_p, cout_p), _pad_bias(bd, cout_p)
        else:
            wdp = bdp = None          # identity residual: handled structurally
        blocks.append(dict(
            w1f=_pack_conv_weight(w1, cin_p, cout_p), b1=_pad_bias(b1, cout_p),
            w2f=_pack_conv_weight(w2, cout_p, cout_p), b2=_pad_bias(b2, cout_p),
            wd=wdp, bd=bdp, dilation=2 ** i, K=kernel_size,
            cin_p=cin_p, cout_p=cout_p))
        in_c = out_c
    key, kf1, kf2 = jax.random.split(key, 3)
    wf = 0.1 * jax.random.normal(kf1, (in_c, output_size), jnp.float32)
    bf = 0.1 * jax.random.normal(kf2, (output_size,), jnp.float32)
    fc = (_pad_matrix(wf, _rpad(in_c), _rpad(output_size)),
          _pad_bias(bf, _rpad(output_size)))
    return blocks, fc


# ---------------------------------------------------------------------------
# Pure-JAX reference mirroring the kernel's math/casting (correctness check)
# ---------------------------------------------------------------------------
def _ref_conv_relu(hf, w_flat, b, K, d):
    B, T, C = hf.shape
    parts = []
    for k in range(K):
        s = (K - 1 - k) * d
        parts.append(jnp.pad(hf, ((0, 0), (s, 0), (0, 0)))[:, :T, :])
    g = jnp.concatenate(parts, axis=-1).astype(jnp.bfloat16)
    acc = jnp.dot(g.reshape(B * T, K * C), w_flat,
                  preferred_element_type=jnp.float32).reshape(B, T, -1)
    return jnp.maximum(acc + b, 0.0)


def tcn_reference(x, blocks, fc, output_size):
    B, T, cin = x.shape
    cin_p = blocks[0]["cin_p"]
    h = jnp.pad(x, ((0, 0), (0, 0), (0, cin_p - cin))).astype(jnp.bfloat16)
    for p in blocks:
        hb, hf = h, h.astype(jnp.float32)
        h1 = _ref_conv_relu(hf, p["w1f"], p["b1"], p["K"], p["dilation"])
        h2 = _ref_conv_relu(h1, p["w2f"], p["b2"], p["K"], p["dilation"])
        if p["wd"] is not None:
            res = jnp.dot(hb.reshape(B * T, -1), p["wd"],
                          preferred_element_type=jnp.float32
                          ).reshape(B, T, -1) + p["bd"]
        else:
            res = hf
        h = jnp.maximum(h2 + res, 0.0).astype(jnp.bfloat16)
    wf, bf = fc
    y = jnp.dot(h[:, -1, :], wf, preferred_element_type=jnp.float32) + bf
    return y[:, :output_size]


if __name__ == "__main__":
    B, T = 2, 16
    input_size, output_size = 4, 3
    num_channels = [8, 16, 16]   # last block exercises the identity-residual path
    kernel_size = 2

    key = jax.random.PRNGKey(0)
    key, kx, kp = jax.random.split(key, 3)
    x = jax.random.normal(kx, (B, T, input_size), jnp.float32)

    blocks, fc = init_tcn_params(kp, input_size, output_size, num_channels,
                                 kernel_size)

    out = tcn_forward(x, blocks, fc, output_size)
    out = jax.block_until_ready(out)
    assert out.shape == (B, output_size), out.shape

    ref = tcn_reference(x, blocks, fc, output_size)
    assert jnp.allclose(out, ref, rtol=1e-2, atol=1e-2), (out, ref)
    print("KERNEL_OK")
</pallas_src>

<mosaic_0001>
module attributes {stable_mosaic.version = 11 : i64} {
  func.func @_tcn_kernel(%arg0: i32, %arg1: memref<32x128xbf16, #tpu.memory_space<vmem>>, %arg2: memref<256x128xbf16, #tpu.memory_space<vmem>>, %arg3: memref<1x128xf32, #tpu.memory_space<vmem>>, %arg4: memref<256x128xbf16, #tpu.memory_space<vmem>>, %arg5: memref<1x128xf32, #tpu.memory_space<vmem>>, %arg6: memref<128x128xbf16, #tpu.memory_space<vmem>>, %arg7: memref<1x128xf32, #tpu.memory_space<vmem>>, %arg8: memref<256x128xbf16, #tpu.memory_space<vmem>>, %arg9: memref<1x128xf32, #tpu.memory_space<vmem>>, %arg10: memref<256x128xbf16, #tpu.memory_space<vmem>>, %arg11: memref<1x128xf32, #tpu.memory_space<vmem>>, %arg12: memref<128x128xbf16, #tpu.memory_space<vmem>>, %arg13: memref<1x128xf32, #tpu.memory_space<vmem>>, %arg14: memref<256x128xbf16, #tpu.memory_space<vmem>>, %arg15: memref<1x128xf32, #tpu.memory_space<vmem>>, %arg16: memref<256x128xbf16, #tpu.memory_space<vmem>>, %arg17: memref<1x128xf32, #tpu.memory_space<vmem>>, %arg18: memref<128x128xbf16, #tpu.memory_space<vmem>>, %arg19: memref<1x128xf32, #tpu.memory_space<vmem>>, %arg20: memref<2x1x128xf32, #tpu.memory_space<vmem>>) attributes {dimension_semantics = [#tpu.dimension_semantics<parallel>], iteration_bounds = array<i64: 1>, scalar_prefetch = 0 : i64, scratch_operands = 0 : i64, tpu.core_type = #tpu.core_type<tc>, window_params = [{transform_indices = @transform_0, window_bounds = array<i64: 32, 128>}, {pipeline_mode = #tpu.pipeline_mode<synchronous>, transform_indices = @transform_1, window_bounds = array<i64: 256, 128>}, {pipeline_mode = #tpu.pipeline_mode<synchronous>, transform_indices = @transform_2, window_bounds = array<i64: 1, 128>}, {pipeline_mode = #tpu.pipeline_mode<synchronous>, transform_indices = @transform_3, window_bounds = array<i64: 256, 128>}, {pipeline_mode = #tpu.pipeline_mode<synchronous>, transform_indices = @transform_4, window_bounds = array<i64: 1, 128>}, {pipeline_mode = #tpu.pipeline_mode<synchronous>, transform_indices = @transform_5, window_bounds = array<i64: 128, 128>}, {pipeline_mode = #tpu.pipeline_mode<synchronous>, transform_indices = @transform_6, window_bounds = array<i64: 1, 128>}, {pipeline_mode = #tpu.pipeline_mode<synchronous>, transform_indices = @transform_7, window_bounds = array<i64: 256, 128>}, {pipeline_mode = #tpu.pipeline_mode<synchronous>, transform_indices = @transform_8, window_bounds = array<i64: 1, 128>}, {pipeline_mode = #tpu.pipeline_mode<synchronous>, transform_indices = @transform_9, window_bounds = array<i64: 256, 128>}, {pipeline_mode = #tpu.pipeline_mode<synchronous>, transform_indices = @transform_10, window_bounds = array<i64: 1, 128>}, {pipeline_mode = #tpu.pipeline_mode<synchronous>, transform_indices = @transform_11, window_bounds = array<i64: 128, 128>}, {pipeline_mode = #tpu.pipeline_mode<synchronous>, transform_indices = @transform_12, window_bounds = array<i64: 1, 128>}, {pipeline_mode = #tpu.pipeline_mode<synchronous>, transform_indices = @transform_13, window_bounds = array<i64: 256, 128>}, {pipeline_mode = #tpu.pipeline_mode<synchronous>, transform_indices = @transform_14, window_bounds = array<i64: 1, 128>}, {pipeline_mode = #tpu.pipeline_mode<synchronous>, transform_indices = @transform_15, window_bounds = array<i64: 256, 128>}, {pipeline_mode = #tpu.pipeline_mode<synchronous>, transform_indices = @transform_16, window_bounds = array<i64: 1, 128>}, {pipeline_mode = #tpu.pipeline_mode<synchronous>, transform_indices = @transform_17, window_bounds = array<i64: 128, 128>}, {pipeline_mode = #tpu.pipeline_mode<synchronous>, transform_indices = @transform_18, window_bounds = array<i64: 1, 128>}, {transform_indices = @transform_19, window_bounds = array<i64: 2, 1, 128>}]} {
    %c0 = arith.constant 0 : index
    %c0_0 = arith.constant 0 : index
    %0 = vector.load %arg1[%c0, %c0_0] : memref<32x128xbf16, #tpu.memory_space<vmem>>, vector<32x128xbf16>
    %1 = arith.extf %0 : vector<32x128xbf16> to vector<32x128xf32>
    %c1_i32 = arith.constant 1 : i32
    %2 = tpu.dynamic_rotate %1 by %c1_i32 dim 0 : vector<32x128xf32>, i32 -> vector<32x128xf32>
    %3 = tpu.iota {dimensions = array<i32: 0>} : vector<32x128xi32>
    %c16_i32 = arith.constant 16 : i32
    %c0_i32 = arith.constant 0 : i32
    %4 = arith.cmpi eq, %c16_i32, %c0_i32 : i32
    %c1_i32_1 = arith.constant 1 : i32
    %5 = arith.select %4, %c1_i32_1, %c16_i32 : i32
    %6 = vector.broadcast %5 : i32 to vector<32x128xi32>
    %7 = arith.remsi %3, %6 : vector<32x128xi32>
    %c0_i32_2 = arith.constant 0 : i32
    %8 = vector.broadcast %c0_i32_2 : i32 to vector<32x128xi32>
    %9 = arith.cmpi ne, %7, %8 : vector<32x128xi32>
    %c0_i32_3 = arith.constant 0 : i32
    %10 = vector.broadcast %c0_i32_3 : i32 to vector<32x128xi32>
    %11 = arith.cmpi slt, %7, %10 : vector<32x128xi32>
    %c0_i32_4 = arith.constant 0 : i32
    %12 = arith.cmpi slt, %5, %c0_i32_4 : i32
    %13 = vector.broadcast %12 : i1 to vector<32x128xi1>
    %14 = vector.broadcast %13 : vector<32x128xi1> to vector<32x128xi1>
    %15 = arith.xori %11, %14 : vector<32x128xi1>
    %16 = arith.andi %15, %9 : vector<32x128xi1>
    %17 = vector.broadcast %5 : i32 to vector<32x128xi32>
    %18 = arith.addi %7, %17 : vector<32x128xi32>
    %19 = arith.select %16, %18, %7 : vector<32x128xi1>, vector<32x128xi32>
    %c1_i32_5 = arith.constant 1 : i32
    %20 = vector.broadcast %c1_i32_5 : i32 to vector<32x128xi32>
    %21 = arith.cmpi sge, %19, %20 : vector<32x128xi32>
    %cst = arith.constant 0.000000e+00 : f32
    %22 = vector.broadcast %cst : f32 to vector<32x128xf32>
    %23 = arith.select %21, %2, %22 : vector<32x128xi1>, vector<32x128xf32>
    %24 = arith.truncf %23 : vector<32x128xf32> to vector<32x128xbf16>
    %25 = tpu.concatenate %24, %0 in 1 : vector<32x128xbf16>, vector<32x128xbf16> -> vector<32x256xbf16>
    %c0_6 = arith.constant 0 : index
    %c0_7 = arith.constant 0 : index
    %26 = vector.load %arg2[%c0_6, %c0_7] : memref<256x128xbf16, #tpu.memory_space<vmem>>, vector<256x128xbf16>
    %cst_8 = arith.constant dense<0.000000e+00> : vector<32x128xf32>
    %27 = tpu.matmul %25, %26, %cst_8 {dimension_numbers = #tpu.dot_dimension_numbers<[1], [0], [0], [1], [0, 0, 1, 1], [], []>} : vector<32x256xbf16>, vector<256x128xbf16>, vector<32x128xf32> -> vector<32x128xf32>
    %c0_9 = arith.constant 0 : index
    %c0_10 = arith.constant 0 : index
    %28 = vector.load %arg3[%c0_9, %c0_10] : memref<1x128xf32, #tpu.memory_space<vmem>>, vector<1x128xf32>
    %29 = vector.broadcast %28 : vector<1x128xf32> to vector<32x128xf32>
    %30 = arith.addf %27, %29 : vector<32x128xf32>
    %cst_11 = arith.constant 0.000000e+00 : f32
    %31 = vector.broadcast %cst_11 : f32 to vector<32x128xf32>
    %32 = arith.maximumf %30, %31 : vector<32x128xf32>
    %c1_i32_12 = arith.constant 1 : i32
    %33 = tpu.dynamic_rotate %32 by %c1_i32_12 dim 0 : vector<32x128xf32>, i32 -> vector<32x128xf32>
    %cst_13 = arith.constant 0.000000e+00 : f32
    %34 = vector.broadcast %cst_13 : f32 to vector<32x128xf32>
    %35 = arith.select %21, %33, %34 : vector<32x128xi1>, vector<32x128xf32>
    %36 = arith.truncf %35 : vector<32x128xf32> to vector<32x128xbf16>
    %37 = arith.truncf %32 : vector<32x128xf32> to vector<32x128xbf16>
    %38 = tpu.concatenate %36, %37 in 1 : vector<32x128xbf16>, vector<32x128xbf16> -> vector<32x256xbf16>
    %c0_14 = arith.constant 0 : index
    %c0_15 = arith.constant 0 : index
    %39 = vector.load %arg4[%c0_14, %c0_15] : memref<256x128xbf16, #tpu.memory_space<vmem>>, vector<256x128xbf16>
    %cst_16 = arith.constant dense<0.000000e+00> : vector<32x128xf32>
    %40 = tpu.matmul %38, %39, %cst_16 {dimension_numbers = #tpu.dot_dimension_numbers<[1], [0], [0], [1], [0, 0, 1, 1], [], []>} : vector<32x256xbf16>, vector<256x128xbf16>, vector<32x128xf32> -> vector<32x128xf32>
    %c0_17 = arith.constant 0 : index
    %c0_18 = arith.constant 0 : index
    %41 = vector.load %arg5[%c0_17, %c0_18] : memref<1x128xf32, #tpu.memory_space<vmem>>, vector<1x128xf32>
    %42 = vector.broadcast %41 : vector<1x128xf32> to vector<32x128xf32>
    %43 = arith.addf %40, %42 : vector<32x128xf32>
    %cst_19 = arith.constant 0.000000e+00 : f32
    %44 = vector.broadcast %cst_19 : f32 to vector<32x128xf32>
    %45 = arith.maximumf %43, %44 : vector<32x128xf32>
    %c0_20 = arith.constant 0 : index
    %c0_21 = arith.constant 0 : index
    %46 = vector.load %arg6[%c0_20, %c0_21] : memref<128x128xbf16, #tpu.memory_space<vmem>>, vector<128x128xbf16>
    %cst_22 = arith.constant dense<0.000000e+00> : vector<32x128xf32>
    %47 = tpu.matmul %0, %46, %cst_22 {dimension_numbers = #tpu.dot_dimension_numbers<[1], [0], [0], [1], [0, 0, 1, 1], [], []>} : vector<32x128xbf16>, vector<128x128xbf16>, vector<32x128xf32> -> vector<32x128xf32>
    %c0_23 = arith.constant 0 : index
    %c0_24 = arith.constant 0 : index
    %48 = vector.load %arg7[%c0_23, %c0_24] : memref<1x128xf32, #tpu.memory_space<vmem>>, vector<1x128xf32>
    %49 = vector.broadcast %48 : vector<1x128xf32> to vector<32x128xf32>
    %50 = arith.addf %47, %49 : vector<32x128xf32>
    %51 = arith.addf %45, %50 : vector<32x128xf32>
    %cst_25 = arith.constant 0.000000e+00 : f32
    %52 = vector.broadcast %cst_25 : f32 to vector<32x128xf32>
    %53 = arith.maximumf %51, %52 : vector<32x128xf32>
    %54 = arith.truncf %53 : vector<32x128xf32> to vector<32x128xbf16>
    %55 = arith.extf %54 : vector<32x128xbf16> to vector<32x128xf32>
    %c2_i32 = arith.constant 2 : i32
    %56 = tpu.dynamic_rotate %55 by %c2_i32 dim 0 : vector<32x128xf32>, i32 -> vector<32x128xf32>
    %c2_i32_26 = arith.constant 2 : i32
    %57 = vector.broadcast %c2_i32_26 : i32 to vector<32x128xi32>
    %58 = arith.cmpi sge, %19, %57 : vector<32x128xi32>
    %cst_27 = arith.constant 0.000000e+00 : f32
    %59 = vector.broadcast %cst_27 : f32 to vector<32x128xf32>
    %60 = arith.select %58, %56, %59 : vector<32x128xi1>, vector<32x128xf32>
    %61 = arith.truncf %60 : vector<32x128xf32> to vector<32x128xbf16>
    %62 = tpu.concatenate %61, %54 in 1 : vector<32x128xbf16>, vector<32x128xbf16> -> vector<32x256xbf16>
    %c0_28 = arith.constant 0 : index
    %c0_29 = arith.constant 0 : index
    %63 = vector.load %arg8[%c0_28, %c0_29] : memref<256x128xbf16, #tpu.memory_space<vmem>>, vector<256x128xbf16>
    %cst_30 = arith.constant dense<0.000000e+00> : vector<32x128xf32>
    %64 = tpu.matmul %62, %63, %cst_30 {dimension_numbers = #tpu.dot_dimension_numbers<[1], [0], [0], [1], [0, 0, 1, 1], [], []>} : vector<32x256xbf16>, vector<256x128xbf16>, vector<32x128xf32> -> vector<32x128xf32>
    %c0_31 = arith.constant 0 : index
    %c0_32 = arith.constant 0 : index
    %65 = vector.load %arg9[%c0_31, %c0_32] : memref<1x128xf32, #tpu.memory_space<vmem>>, vector<1x128xf32>
    %66 = vector.broadcast %65 : vector<1x128xf32> to vector<32x128xf32>
    %67 = arith.addf %64, %66 : vector<32x128xf32>
    %cst_33 = arith.constant 0.000000e+00 : f32
    %68 = vector.broadcast %cst_33 : f32 to vector<32x128xf32>
    %69 = arith.maximumf %67, %68 : vector<32x128xf32>
    %c2_i32_34 = arith.constant 2 : i32
    %70 = tpu.dynamic_rotate %69 by %c2_i32_34 dim 0 : vector<32x128xf32>, i32 -> vector<32x128xf32>
    %cst_35 = arith.constant 0.000000e+00 : f32
    %71 = vector.broadcast %cst_35 : f32 to vector<32x128xf32>
    %72 = arith.select %58, %70, %71 : vector<32x128xi1>, vector<32x128xf32>
    %73 = arith.truncf %72 : vector<32x128xf32> to vector<32x128xbf16>
    %74 = arith.truncf %69 : vector<32x128xf32> to vector<32x128xbf16>
    %75 = tpu.concatenate %73, %74 in 1 : vector<32x128xbf16>, vector<32x128xbf16> -> vector<32x256xbf16>
    %c0_36 = arith.constant 0 : index
    %c0_37 = arith.constant 0 : index
    %76 = vector.load %arg10[%c0_36, %c0_37] : memref<256x128xbf16, #tpu.memory_space<vmem>>, vector<256x128xbf16>
    %cst_38 = arith.constant dense<0.000000e+00> : vector<32x128xf32>
    %77 = tpu.matmul %75, %76, %cst_38 {dimension_numbers = #tpu.dot_dimension_numbers<[1], [0], [0], [1], [0, 0, 1, 1], [], []>} : vector<32x256xbf16>, vector<256x128xbf16>, vector<32x128xf32> -> vector<32x128xf32>
    %c0_39 = arith.constant 0 : index
    %c0_40 = arith.constant 0 : index
    %78 = vector.load %arg11[%c0_39, %c0_40] : memref<1x128xf32, #tpu.memory_space<vmem>>, vector<1x128xf32>
    %79 = vector.broadcast %78 : vector<1x128xf32> to vector<32x128xf32>
    %80 = arith.addf %77, %79 : vector<32x128xf32>
    %cst_41 = arith.constant 0.000000e+00 : f32
    %81 = vector.broadcast %cst_41 : f32 to vector<32x128xf32>
    %82 = arith.maximumf %80, %81 : vector<32x128xf32>
    %c0_42 = arith.constant 0 : index
    %c0_43 = arith.constant 0 : index
    %83 = vector.load %arg12[%c0_42, %c0_43] : memref<128x128xbf16, #tpu.memory_space<vmem>>, vector<128x128xbf16>
    %cst_44 = arith.constant dense<0.000000e+00> : vector<32x128xf32>
    %84 = tpu.matmul %54, %83, %cst_44 {dimension_numbers = #tpu.dot_dimension_numbers<[1], [0], [0], [1], [0, 0, 1, 1], [], []>} : vector<32x128xbf16>, vector<128x128xbf16>, vector<32x128xf32> -> vector<32x128xf32>
    %c0_45 = arith.constant 0 : index
    %c0_46 = arith.constant 0 : index
    %85 = vector.load %arg13[%c0_45, %c0_46] : memref<1x128xf32, #tpu.memory_space<vmem>>, vector<1x128xf32>
    %86 = vector.broadcast %85 : vector<1x128xf32> to vector<32x128xf32>
    %87 = arith.addf %84, %86 : vector<32x128xf32>
    %88 = arith.addf %82, %87 : vector<32x128xf32>
    %cst_47 = arith.constant 0.000000e+00 : f32
    %89 = vector.broadcast %cst_47 : f32 to vector<32x128xf32>
    %90 = arith.maximumf %88, %89 : vector<32x128xf32>
    %91 = arith.truncf %90 : vector<32x128xf32> to vector<32x128xbf16>
    %92 = arith.extf %91 : vector<32x128xbf16> to vector<32x128xf32>
    %c4_i32 = arith.constant 4 : i32
    %93 = tpu.dynamic_rotate %92 by %c4_i32 dim 0 : vector<32x128xf32>, i32 -> vector<32x128xf32>
    %c4_i32_48 = arith.constant 4 : i32
    %94 = vector.broadcast %c4_i32_48 : i32 to vector<32x128xi32>
    %95 = arith.cmpi sge, %19, %94 : vector<32x128xi32>
    %cst_49 = arith.constant 0.000000e+00 : f32
    %96 = vector.broadcast %cst_49 : f32 to vector<32x128xf32>
    %97 = arith.select %95, %93, %96 : vector<32x128xi1>, vector<32x128xf32>
    %98 = arith.truncf %97 : vector<32x128xf32> to vector<32x128xbf16>
    %99 = tpu.concatenate %98, %91 in 1 : vector<32x128xbf16>, vector<32x128xbf16> -> vector<32x256xbf16>
    %c0_50 = arith.constant 0 : index
    %c0_51 = arith.constant 0 : index
    %100 = vector.load %arg14[%c0_50, %c0_51] : memref<256x128xbf16, #tpu.memory_space<vmem>>, vector<256x128xbf16>
    %cst_52 = arith.constant dense<0.000000e+00> : vector<32x128xf32>
    %101 = tpu.matmul %99, %100, %cst_52 {dimension_numbers = #tpu.dot_dimension_numbers<[1], [0], [0], [1], [0, 0, 1, 1], [], []>} : vector<32x256xbf16>, vector<256x128xbf16>, vector<32x128xf32> -> vector<32x128xf32>
    %c0_53 = arith.constant 0 : index
    %c0_54 = arith.constant 0 : index
    %102 = vector.load %arg15[%c0_53, %c0_54] : memref<1x128xf32, #tpu.memory_space<vmem>>, vector<1x128xf32>
    %103 = vector.broadcast %102 : vector<1x128xf32> to vector<32x128xf32>
    %104 = arith.addf %101, %103 : vector<32x128xf32>
    %cst_55 = arith.constant 0.000000e+00 : f32
    %105 = vector.broadcast %cst_55 : f32 to vector<32x128xf32>
    %106 = arith.maximumf %104, %105 : vector<32x128xf32>
    %107 = vector.extract_strided_slice %106 {offsets = [11, 0], sizes = [1, 128], strides = [1, 1]} : vector<32x128xf32> to vector<1x128xf32>
    %108 = arith.truncf %107 : vector<1x128xf32> to vector<1x128xbf16>
    %109 = vector.extract_strided_slice %106 {offsets = [15, 0], sizes = [1, 128], strides = [1, 1]} : vector<32x128xf32> to vector<1x128xf32>
    %110 = arith.truncf %109 : vector<1x128xf32> to vector<1x128xbf16>
    %111 = tpu.concatenate %108, %110 in 1 : vector<1x128xbf16>, vector<1x128xbf16> -> vector<1x256xbf16>
    %112 = vector.extract_strided_slice %106 {offsets = [27, 0], sizes = [1, 128], strides = [1, 1]} : vector<32x128xf32> to vector<1x128xf32>
    %113 = arith.truncf %112 : vector<1x128xf32> to vector<1x128xbf16>
    %114 = vector.extract_strided_slice %106 {offsets = [31, 0], sizes = [1, 128], strides = [1, 1]} : vector<32x128xf32> to vector<1x128xf32>
    %115 = arith.truncf %114 : vector<1x128xf32> to vector<1x128xbf16>
    %116 = tpu.concatenate %113, %115 in 1 : vector<1x128xbf16>, vector<1x128xbf16> -> vector<1x256xbf16>
    %117 = tpu.concatenate %111, %116 in 0 : vector<1x256xbf16>, vector<1x256xbf16> -> vector<2x256xbf16>
    %c0_56 = arith.constant 0 : index
    %c0_57 = arith.constant 0 : index
    %118 = vector.load %arg16[%c0_56, %c0_57] : memref<256x128xbf16, #tpu.memory_space<vmem>>, vector<256x128xbf16>
    %cst_58 = arith.constant dense<0.000000e+00> : vector<2x128xf32>
    %119 = tpu.matmul %117, %118, %cst_58 {dimension_numbers = #tpu.dot_dimension_numbers<[1], [0], [0], [1], [0, 0, 1, 1], [], []>} : vector<2x256xbf16>, vector<256x128xbf16>, vector<2x128xf32> -> vector<2x128xf32>
    %c0_59 = arith.constant 0 : index
    %c0_60 = arith.constant 0 : index
    %120 = vector.load %arg17[%c0_59, %c0_60] : memref<1x128xf32, #tpu.memory_space<vmem>>, vector<1x128xf32>
    %121 = vector.broadcast %120 : vector<1x128xf32> to vector<2x128xf32>
    %122 = arith.addf %119, %121 : vector<2x128xf32>
    %cst_61 = arith.constant 0.000000e+00 : f32
    %123 = vector.broadcast %cst_61 : f32 to vector<2x128xf32>
    %124 = arith.maximumf %122, %123 : vector<2x128xf32>
    %125 = vector.extract_strided_slice %91 {offsets = [15, 0], sizes = [1, 128], strides = [1, 1]} : vector<32x128xbf16> to vector<1x128xbf16>
    %126 = vector.extract_strided_slice %91 {offsets = [31, 0], sizes = [1, 128], strides = [1, 1]} : vector<32x128xbf16> to vector<1x128xbf16>
    %127 = tpu.concatenate %125, %126 in 0 : vector<1x128xbf16>, vector<1x128xbf16> -> vector<2x128xbf16>
    %128 = arith.extf %127 : vector<2x128xbf16> to vector<2x128xf32>
    %129 = arith.addf %124, %128 : vector<2x128xf32>
    %cst_62 = arith.constant 0.000000e+00 : f32
    %130 = vector.broadcast %cst_62 : f32 to vector<2x128xf32>
    %131 = arith.maximumf %129, %130 : vector<2x128xf32>
    %132 = arith.truncf %131 : vector<2x128xf32> to vector<2x128xbf16>
    %c0_63 = arith.constant 0 : index
    %c0_64 = arith.constant 0 : index
    %133 = vector.load %arg18[%c0_63, %c0_64] : memref<128x128xbf16, #tpu.memory_space<vmem>>, vector<128x128xbf16>
    %cst_65 = arith.constant dense<0.000000e+00> : vector<2x128xf32>
    %134 = tpu.matmul %132, %133, %cst_65 {dimension_numbers = #tpu.dot_dimension_numbers<[1], [0], [0], [1], [0, 0, 1, 1], [], []>} : vector<2x128xbf16>, vector<128x128xbf16>, vector<2x128xf32> -> vector<2x128xf32>
    %c0_66 = arith.constant 0 : index
    %c0_67 = arith.constant 0 : index
    %135 = vector.load %arg19[%c0_66, %c0_67] : memref<1x128xf32, #tpu.memory_space<vmem>>, vector<1x128xf32>
    %136 = vector.broadcast %135 : vector<1x128xf32> to vector<2x128xf32>
    %137 = arith.addf %134, %136 : vector<2x128xf32>
    %138 = vector.shape_cast %137 : vector<2x128xf32> to vector<2x1x128xf32>
    %c0_68 = arith.constant 0 : index
    %c0_69 = arith.constant 0 : index
    %c0_70 = arith.constant 0 : index
    %139 = vector.load %arg20[%c0_68, %c0_69, %c0_70] : memref<2x1x128xf32, #tpu.memory_space<vmem>>, vector<2x1x128xf32>
    tpu.vector_store %arg20[%c0_68, %c0_69, %c0_70], %138 {strides = array<i32>} : memref<2x1x128xf32, #tpu.memory_space<vmem>>, vector<2x1x128xf32>,
    return
  }
  func.func @transform_0(%arg0: i32) -> (i32, i32) {
    %c0_i32 = arith.constant 0 : i32
    %c0_i32_0 = arith.constant 0 : i32
    return %arg0, %c0_i32 : i32, i32
  }
  func.func @transform_1(%arg0: i32) -> (i32, i32) {
    %c0_i32 = arith.constant 0 : i32
    %c0_i32_0 = arith.constant 0 : i32
    %c0_i32_1 = arith.constant 0 : i32
    return %c0_i32, %c0_i32_0 : i32, i32
  }
  func.func @transform_2(%arg0: i32) -> (i32, i32) {
    %c0_i32 = arith.constant 0 : i32
    %c0_i32_0 = arith.constant 0 : i32
    %c0_i32_1 = arith.constant 0 : i32
    return %c0_i32, %c0_i32_0 : i32, i32
  }
  func.func @transform_3(%arg0: i32) -> (i32, i32) {
    %c0_i32 = arith.constant 0 : i32
    %c0_i32_0 = arith.constant 0 : i32
    %c0_i32_1 = arith.constant 0 : i32
    return %c0_i32, %c0_i32_0 : i32, i32
  }
  func.func @transform_4(%arg0: i32) -> (i32, i32) {
    %c0_i32 = arith.constant 0 : i32
    %c0_i32_0 = arith.constant 0 : i32
    %c0_i32_1 = arith.constant 0 : i32
    return %c0_i32, %c0_i32_0 : i32, i32
  }
  func.func @transform_5(%arg0: i32) -> (i32, i32) {
    %c0_i32 = arith.constant 0 : i32
    %c0_i32_0 = arith.constant 0 : i32
    %c0_i32_1 = arith.constant 0 : i32
    return %c0_i32, %c0_i32_0 : i32, i32
  }
  func.func @transform_6(%arg0: i32) -> (i32, i32) {
    %c0_i32 = arith.constant 0 : i32
    %c0_i32_0 = arith.constant 0 : i32
    %c0_i32_1 = arith.constant 0 : i32
    return %c0_i32, %c0_i32_0 : i32, i32
  }
  func.func @transform_7(%arg0: i32) -> (i32, i32) {
    %c0_i32 = arith.constant 0 : i32
    %c0_i32_0 = arith.constant 0 : i32
    %c0_i32_1 = arith.constant 0 : i32
    return %c0_i32, %c0_i32_0 : i32, i32
  }
  func.func @transform_8(%arg0: i32) -> (i32, i32) {
    %c0_i32 = arith.constant 0 : i32
    %c0_i32_0 = arith.constant 0 : i32
    %c0_i32_1 = arith.constant 0 : i32
    return %c0_i32, %c0_i32_0 : i32, i32
  }
  func.func @transform_9(%arg0: i32) -> (i32, i32) {
    %c0_i32 = arith.constant 0 : i32
    %c0_i32_0 = arith.constant 0 : i32
    %c0_i32_1 = arith.constant 0 : i32
    return %c0_i32, %c0_i32_0 : i32, i32
  }
  func.func @transform_10(%arg0: i32) -> (i32, i32) {
    %c0_i32 = arith.constant 0 : i32
    %c0_i32_0 = arith.constant 0 : i32
    %c0_i32_1 = arith.constant 0 : i32
    return %c0_i32, %c0_i32_0 : i32, i32
  }
  func.func @transform_11(%arg0: i32) -> (i32, i32) {
    %c0_i32 = arith.constant 0 : i32
    %c0_i32_0 = arith.constant 0 : i32
    %c0_i32_1 = arith.constant 0 : i32
    return %c0_i32, %c0_i32_0 : i32, i32
  }
  func.func @transform_12(%arg0: i32) -> (i32, i32) {
    %c0_i32 = arith.constant 0 : i32
    %c0_i32_0 = arith.constant 0 : i32
    %c0_i32_1 = arith.constant 0 : i32
    return %c0_i32, %c0_i32_0 : i32, i32
  }
  func.func @transform_13(%arg0: i32) -> (i32, i32) {
    %c0_i32 = arith.constant 0 : i32
    %c0_i32_0 = arith.constant 0 : i32
    %c0_i32_1 = arith.constant 0 : i32
    return %c0_i32, %c0_i32_0 : i32, i32
  }
  func.func @transform_14(%arg0: i32) -> (i32, i32) {
    %c0_i32 = arith.constant 0 : i32
    %c0_i32_0 = arith.constant 0 : i32
    %c0_i32_1 = arith.constant 0 : i32
    return %c0_i32, %c0_i32_0 : i32, i32
  }
  func.func @transform_15(%arg0: i32) -> (i32, i32) {
    %c0_i32 = arith.constant 0 : i32
    %c0_i32_0 = arith.constant 0 : i32
    %c0_i32_1 = arith.constant 0 : i32
    return %c0_i32, %c0_i32_0 : i32, i32
  }
  func.func @transform_16(%arg0: i32) -> (i32, i32) {
    %c0_i32 = arith.constant 0 : i32
    %c0_i32_0 = arith.constant 0 : i32
    %c0_i32_1 = arith.constant 0 : i32
    return %c0_i32, %c0_i32_0 : i32, i32
  }
  func.func @transform_17(%arg0: i32) -> (i32, i32) {
    %c0_i32 = arith.constant 0 : i32
    %c0_i32_0 = arith.constant 0 : i32
    %c0_i32_1 = arith.constant 0 : i32
    return %c0_i32, %c0_i32_0 : i32, i32
  }
  func.func @transform_18(%arg0: i32) -> (i32, i32) {
    %c0_i32 = arith.constant 0 : i32
    %c0_i32_0 = arith.constant 0 : i32
    %c0_i32_1 = arith.constant 0 : i32
    return %c0_i32, %c0_i32_0 : i32, i32
  }
  func.func @transform_19(%arg0: i32) -> (i32, i32, i32) {
    %c0_i32 = arith.constant 0 : i32
    %c0_i32_0 = arith.constant 0 : i32
    %c0_i32_1 = arith.constant 0 : i32
    return %arg0, %c0_i32, %c0_i32_0 : i32, i32, i32
  }
}

</mosaic_0001>

<bundles_post_ra>
// kernel: tpu_custom_call.1
= control target key start
LH: loop header
LB: loop body
LE: loop exit
PB: predicated region body
PF: predicated region fallthrough
CT: control target
= control target key end

     0   :  { %s3556_s0 = inlined_call_operand.hbm [shape: bf16[32,128], index: 0, kind: input, shape index: {}]   ;;  %s3557_s1 = inlined_call_operand.hbm [shape: bf16[256,128], index: 1, kind: input, shape index: {}]   ;;  %s3558_s2 = inlined_call_operand.hbm [shape: f32[1,128], index: 2, kind: input, shape index: {}]   ;;  %s3559_s3 = inlined_call_operand.hbm [shape: bf16[256,128], index: 3, kind: input, shape index: {}]   ;;  %s3560_s4 = inlined_call_operand.hbm [shape: f32[1,128], index: 4, kind: input, shape index: {}]   ;;  %s3561_s5 = inlined_call_operand.hbm [shape: bf16[128,128], index: 5, kind: input, shape index: {}]   ;;  %s3562_s6 = inlined_call_operand.hbm [shape: f32[1,128], index: 6, kind: input, shape index: {}]   ;;  %s3563_s7 = inlined_call_operand.hbm [shape: bf16[256,128], index: 7, kind: input, shape index: {}]   ;;  %s3564_s8 = inlined_call_operand.hbm [shape: f32[1,128], index: 8, kind: input, shape index: {}]   ;;  %s3565_s9 = inlined_call_operand.hbm [shape: bf16[256,128], index: 9, kind: input, shape index: {}]   ;;  %s3566_s10 = inlined_call_operand.hbm [shape: f32[1,128], index: 10, kind: input, shape index: {}]   ;;  %s3567_s11 = inlined_call_operand.hbm [shape: bf16[128,128], index: 11, kind: input, shape index: {}]   ;;  %s3568_s12 = inlined_call_operand.hbm [shape: f32[1,128], index: 12, kind: input, shape index: {}]   ;;  %s3569_s13 = inlined_call_operand.hbm [shape: bf16[256,128], index: 13, kind: input, shape index: {}]   ;;  %s3570_s14 = inlined_call_operand.hbm [shape: f32[1,128], index: 14, kind: input, shape index: {}]   ;;  %s3571_s15 = inlined_call_operand.hbm [shape: bf16[256,128], index: 15, kind: input, shape index: {}]   ;;  %s3572_s16 = inlined_call_operand.hbm [shape: f32[1,128], index: 16, kind: input, shape index: {}]   ;;  %s3573_s17 = inlined_call_operand.vmem [shape: bf16[128,128], index: 17, kind: input, shape index: {}]   ;;  %s3574_s18 = inlined_call_operand.vmem [shape: f32[1,128], index: 18, kind: input, shape index: {}]   ;;  %s3575_s19 = inlined_call_operand.hbm [shape: f32[2,1,128], index: 19, kind: output, shape index: {}]  }
   0x1   :  { %3581 = sst [smem:[#allocation40_spill]] %s3556_s0 }
   0x2   :  { %3582 = sst [smem:[#allocation41_spill]] %s3557_s1 }
   0x3   :  { %3583 = sst [smem:[#allocation42_spill]] %s3558_s2 }
   0x4   :  { %3584 = sst [smem:[#allocation43_spill]] %s3559_s3 }
   0x5   :  { %3585 = sst [smem:[#allocation44_spill]] %s3574_s18 }
   0x6   :  { %3586 = sst [smem:[#allocation45_spill]] %s3575_s19 }
   0x7   :  { %24 = vsyncpa [#allocation3], 0 }
   0x8   :  { %25 = vsyncpa [#allocation6], 0 }
   0x9   :  { %26 = vsyncpa [#allocation9], 0 }
   0xa   :  { %27 = vsyncpa [#allocation12], 0 }
   0xb   :  { %28 = vsyncpa [#allocation15], 0 }
   0xc   :  { %29 = vsyncpa [#allocation18], 0 }
   0xd   :  { %30 = vsyncpa [#allocation21], 0 }
   0xe   :  { %31 = vsyncpa [#allocation24], 0 }
   0xf   :  { %32 = vsyncpa [#allocation27], 0 }
  0x10   :  { %33 = vsyncpa [#allocation4], 0  ;;  %s3002_s0 = smov [#allocation5]   ;;  %s3003_s20 = smov [#allocation8]  }
  0x11   :  { %s51_s30 = sshll.u32 %s3002_s0, 4  ;;  %s73_s21 = sshll.u32 %s3003_s20, 4  ;;  %s52_s30 = int_to_ptr.vmem [resolvable:$true] %s51_s30  ;;  %s3128_s21 = int_to_ptr.vmem [resolvable:$true] %s73_s21 }
  0x12   :  { %s3587_s2 = sld [smem:[#allocation41_spill]] }
  0x18   :  { %s2586_s23 = scalar_lea.hbm %s3587_s2, 2048 }
  0x19   :  { %p2587_p0 = scmp.ne.s32.totalorder %s3587_s2, %s2586_s23  ;;  %p2590_p1 = scmp.lt.u32.totalorder %s2586_s23, %s3587_s2 }
  0x1b   :  { %p2592_p2 = pnand %p2590_p1, %p2587_p0 }
  0x1d   :  { %2595 = shalt.err (!%p2592_p2)
}
  0x1e   :  { %s2596_s27 = scalar_lea.vmem %s52_s30, 2048  ;;  %p2601_p4 = scmp.lt.s32.totalorder %s52_s30, %s52_s30 }
  0x1f   :  { %p2597_p3 = scmp.ne.s32.totalorder %s52_s30, %s2596_s27  ;;  %p2602_p5 = scmp.lt.s32.totalorder %s2596_s27, %s2596_s27 }
  0x21   :  { %p2603_p6 = por %p2602_p5, %p2601_p4 }
  0x23   :  { %p2604_p7 = pnand %p2603_p6, %p2597_p3 }
  0x25   :  { %2607 = shalt.err (!%p2604_p7)
}
  0x26   :  { %s3004_s28 = smov 64   ;;  %s3005_s29 = smov 4  }
  0x27   :  { %57 = dma.hbm_to_vmem [thread:$0]  %s3587_s2, 2048, %s52_s30, [#allocation6], %s3004_s28, %s3004_s28, %s3005_s29  }
  0x28   :  { %s3588_s23 = sld [smem:[#allocation43_spill]] }
  0x2e   :  { %s2608_s24 = scalar_lea.hbm %s3588_s23, 2048 }
  0x2f   :  { %p2609_p8 = scmp.ne.s32.totalorder %s3588_s23, %s2608_s24  ;;  %p2612_p9 = scmp.lt.u32.totalorder %s2608_s24, %s3588_s23 }
  0x31   :  { %p2614_p10 = pnand %p2612_p9, %p2609_p8 }
  0x33   :  { %2617 = shalt.err (!%p2614_p10)
}
  0x34   :  { %s2618_s19 = scalar_lea.vmem %s3128_s21, 2048  ;;  %p2623_p12 = scmp.lt.s32.totalorder %s3128_s21, %s3128_s21 }
  0x35   :  { %p2619_p11 = scmp.ne.s32.totalorder %s3128_s21, %s2618_s19  ;;  %p2624_p13 = scmp.lt.s32.totalorder %s2618_s19, %s2618_s19 }
  0x37   :  { %p2625_p0 = por %p2624_p13, %p2623_p12 }
  0x39   :  { %p2626_p1 = pnand %p2625_p0, %p2619_p11 }
  0x3b   :  { %2629 = shalt.err (!%p2626_p1)
}
  0x3c   :  { %79 = dma.hbm_to_vmem [thread:$0]  %s3588_s23, 2048, %s3128_s21, [#allocation9], %s3004_s28, %s3004_s28, %s3005_s29  }
  0x3d   :  { %s3006_s0 = smov [#allocation11]   ;;  %s3007_s1 = smov [#allocation14]  }
  0x3e   :  { %s95_s20 = sshll.u32 %s3006_s0, 4  ;;  %s117_s22 = sshll.u32 %s3007_s1, 4  ;;  %s96_s20 = int_to_ptr.vmem [resolvable:$true] %s95_s20  ;;  %s3165_s22 = int_to_ptr.vmem [resolvable:$true] %s117_s22 }
  0x3f   :  { %s2630_s25 = scalar_lea.hbm %s3561_s5, 1024 }
  0x40   :  { %p2631_p2 = scmp.ne.s32.totalorder %s3561_s5, %s2630_s25  ;;  %p2634_p3 = scmp.lt.u32.totalorder %s2630_s25, %s3561_s5 }
  0x42   :  { %p2636_p4 = pnand %p2634_p3, %p2631_p2 }
  0x44   :  { %2639 = shalt.err (!%p2636_p4)
}
  0x45   :  { %s2640_s21 = scalar_lea.vmem %s96_s20, 1024  ;;  %p2645_p6 = scmp.lt.s32.totalorder %s96_s20, %s96_s20 }
  0x46   :  { %p2641_p5 = scmp.ne.s32.totalorder %s96_s20, %s2640_s21  ;;  %p2646_p7 = scmp.lt.s32.totalorder %s2640_s21, %s2640_s21 }
  0x48   :  { %p2647_p8 = por %p2646_p7, %p2645_p6 }
  0x4a   :  { %p2648_p9 = pnand %p2647_p8, %p2641_p5 }
  0x4c   :  { %2651 = shalt.err (!%p2648_p9)
}
  0x4d   :  { %101 = dma.hbm_to_vmem [thread:$0]  %s3561_s5, 1024, %s96_s20, [#allocation12], %s3004_s28, %s3004_s28, %s3005_s29  }
  0x4e   :  { %s2652_s18 = scalar_lea.hbm %s3563_s7, 2048 }
  0x4f   :  { %p2653_p10 = scmp.ne.s32.totalorder %s3563_s7, %s2652_s18  ;;  %p2656_p11 = scmp.lt.u32.totalorder %s2652_s18, %s3563_s7 }
  0x51   :  { %p2658_p12 = pnand %p2656_p11, %p2653_p10 }
  0x53   :  { %2661 = shalt.err (!%p2658_p12)
}
  0x54   :  { %s2662_s3 = scalar_lea.vmem %s3165_s22, 2048  ;;  %p2667_p0 = scmp.lt.s32.totalorder %s3165_s22, %s3165_s22 }
  0x55   :  { %p2663_p13 = scmp.ne.s32.totalorder %s3165_s22, %s2662_s3  ;;  %p2668_p1 = scmp.lt.s32.totalorder %s2662_s3, %s2662_s3 }
  0x57   :  { %p2669_p2 = por %p2668_p1, %p2667_p0 }
  0x59   :  { %p2670_p3 = pnand %p2669_p2, %p2663_p13 }
  0x5b   :  { %2673 = shalt.err (!%p2670_p3)
}
  0x5c   :  { %123 = dma.hbm_to_vmem [thread:$0]  %s3563_s7, 2048, %s3165_s22, [#allocation15], %s3004_s28, %s3004_s28, %s3005_s29  }
  0x5d   :  { %s3008_s26 = smov [#allocation17]   ;;  %s3009_s21 = smov [#allocation20]  }
  0x5e   :  { %s139_s27 = sshll.u32 %s3008_s26, 4  ;;  %s161_s23 = sshll.u32 %s3009_s21, 4  ;;  %s140_s27 = int_to_ptr.vmem [resolvable:$true] %s139_s27  ;;  %s3202_s23 = int_to_ptr.vmem [resolvable:$true] %s161_s23 }
  0x5f   :  { %s2674_s0 = scalar_lea.hbm %s3565_s9, 2048 }
  0x60   :  { %p2675_p4 = scmp.ne.s32.totalorder %s3565_s9, %s2674_s0  ;;  %p2678_p5 = scmp.lt.u32.totalorder %s2674_s0, %s3565_s9 }
  0x62   :  { %p2680_p6 = pnand %p2678_p5, %p2675_p4 }
  0x64   :  { %2683 = shalt.err (!%p2680_p6)
}
  0x65   :  { %s2684_s7 = scalar_lea.vmem %s140_s27, 2048  ;;  %p2689_p8 = scmp.lt.s32.totalorder %s140_s27, %s140_s27 }
  0x66   :  { %p2685_p7 = scmp.ne.s32.totalorder %s140_s27, %s2684_s7  ;;  %p2690_p9 = scmp.lt.s32.totalorder %s2684_s7, %s2684_s7 }
  0x68   :  { %p2691_p10 = por %p2690_p9, %p2689_p8 }
  0x6a   :  { %p2692_p11 = pnand %p2691_p10, %p2685_p7 }
  0x6c   :  { %2695 = shalt.err (!%p2692_p11)
}
  0x6d   :  { %145 = dma.hbm_to_vmem [thread:$0]  %s3565_s9, 2048, %s140_s27, [#allocation18], %s3004_s28, %s3004_s28, %s3005_s29  }
  0x6e   :  { %s2696_s20 = scalar_lea.hbm %s3567_s11, 1024 }
  0x6f   :  { %p2697_p12 = scmp.ne.s32.totalorder %s3567_s11, %s2696_s20  ;;  %p2700_p13 = scmp.lt.u32.totalorder %s2696_s20, %s3567_s11 }
  0x71   :  { %p2702_p0 = pnand %p2700_p13, %p2697_p12 }
  0x73   :  { %2705 = shalt.err (!%p2702_p0)
}
  0x74   :  { %s2706_s0 = scalar_lea.vmem %s3202_s23, 1024  ;;  %p2711_p2 = scmp.lt.s32.totalorder %s3202_s23, %s3202_s23 }
  0x75   :  { %p2707_p1 = scmp.ne.s32.totalorder %s3202_s23, %s2706_s0  ;;  %p2712_p3 = scmp.lt.s32.totalorder %s2706_s0, %s2706_s0 }
  0x77   :  { %p2713_p4 = por %p2712_p3, %p2711_p2 }
  0x79   :  { %p2714_p5 = pnand %p2713_p4, %p2707_p1 }
  0x7b   :  { %2717 = shalt.err (!%p2714_p5)
}
  0x7c   :  { %167 = dma.hbm_to_vmem [thread:$0]  %s3567_s11, 1024, %s3202_s23, [#allocation21], %s3004_s28, %s3004_s28, %s3005_s29  }
  0x7d   :  { %s3010_s18 = smov [#allocation23]   ;;  %s3011_s24 = smov [#allocation26]  }
  0x7e   :  { %s183_s1 = sshll.u32 %s3010_s18, 4  ;;  %s205_s19 = sshll.u32 %s3011_s24, 4  ;;  %s184_s1 = int_to_ptr.vmem [resolvable:$true] %s183_s1  ;;  %s3239_s19 = int_to_ptr.vmem [resolvable:$true] %s205_s19 }
  0x7f   :  { %s2718_s25 = scalar_lea.hbm %s3569_s13, 2048 }
  0x80   :  { %p2719_p6 = scmp.ne.s32.totalorder %s3569_s13, %s2718_s25  ;;  %p2722_p7 = scmp.lt.u32.totalorder %s2718_s25, %s3569_s13 }
  0x82   :  { %p2724_p8 = pnand %p2722_p7, %p2719_p6 }
  0x84   :  { %2727 = shalt.err (!%p2724_p8)
}
  0x85   :  { %s2728_s11 = scalar_lea.vmem %s184_s1, 2048  ;;  %p2733_p10 = scmp.lt.s32.totalorder %s184_s1, %s184_s1 }
  0x86   :  { %p2729_p9 = scmp.ne.s32.totalorder %s184_s1, %s2728_s11  ;;  %p2734_p11 = scmp.lt.s32.totalorder %s2728_s11, %s2728_s11 }
  0x88   :  { %p2735_p12 = por %p2734_p11, %p2733_p10 }
  0x8a   :  { %p2736_p13 = pnand %p2735_p12, %p2729_p9 }
  0x8c   :  { %2739 = shalt.err (!%p2736_p13)
}
  0x8d   :  { %189 = dma.hbm_to_vmem [thread:$0]  %s3569_s13, 2048, %s184_s1, [#allocation24], %s3004_s28, %s3004_s28, %s3005_s29  }
  0x8e   :  { %s2740_s0 = scalar_lea.hbm %s3571_s15, 2048 }
  0x8f   :  { %p2741_p0 = scmp.ne.s32.totalorder %s3571_s15, %s2740_s0  ;;  %p2744_p1 = scmp.lt.u32.totalorder %s2740_s0, %s3571_s15 }
  0x91   :  { %p2746_p2 = pnand %p2744_p1, %p2741_p0 }
  0x93   :  { %2749 = shalt.err (!%p2746_p2)
}
  0x94   :  { %s2750_s7 = scalar_lea.vmem %s3239_s19, 2048  ;;  %p2755_p4 = scmp.lt.s32.totalorder %s3239_s19, %s3239_s19 }
  0x95   :  { %p2751_p3 = scmp.ne.s32.totalorder %s3239_s19, %s2750_s7  ;;  %p2756_p5 = scmp.lt.s32.totalorder %s2750_s7, %s2750_s7 }
  0x97   :  { %p2757_p6 = por %p2756_p5, %p2755_p4 }
  0x99   :  { %p2758_p7 = pnand %p2757_p6, %p2751_p3 }
  0x9b   :  { %2761 = shalt.err (!%p2758_p7)
}
  0x9c   :  { %211 = dma.hbm_to_vmem [thread:$0]  %s3571_s15, 2048, %s3239_s19, [#allocation27], %s3004_s28, %s3004_s28, %s3005_s29  }
  0x9d   :  { %s3012_s22 = smov [#allocation2]   ;;  %s3013_s3 = smov [#allocation7]  }
  0x9e   :  { %s39_s25 = sshll.u32 %s3012_s22, 4  ;;  %s64_s5 = sshll.u32 %s3013_s3, 4  ;;  %s40_s25 = int_to_ptr.vmem [resolvable:$true] %s39_s25  ;;  %s65_s5 = int_to_ptr.vmem [resolvable:$true] %s64_s5 }
  0x9f   :  { %s3589_s11 = sld [smem:[#allocation40_spill]] }
  0xa5   :  { %s2762_s23 = scalar_lea.hbm %s3589_s11, 256 }
  0xa6   :  { %p2763_p8 = scmp.ne.s32.totalorder %s3589_s11, %s2762_s23  ;;  %p2766_p9 = scmp.lt.u32.totalorder %s2762_s23, %s3589_s11 }
  0xa8   :  { %p2768_p10 = pnand %p2766_p9, %p2763_p8 }
  0xaa   :  { %2771 = shalt.err (!%p2768_p10)
}
  0xab   :  { %s2772_s15 = scalar_lea.vmem %s40_s25, 256  ;;  %p2777_p12 = scmp.lt.s32.totalorder %s40_s25, %s40_s25 }
  0xac   :  { %p2773_p11 = scmp.ne.s32.totalorder %s40_s25, %s2772_s15  ;;  %p2778_p13 = scmp.lt.s32.totalorder %s2772_s15, %s2772_s15 }
  0xae   :  { %p2779_p0 = por %p2778_p13, %p2777_p12 }
  0xb0   :  { %p2780_p1 = pnand %p2779_p0, %p2773_p11 }
  0xb2   :  { %2783 = shalt.err (!%p2780_p1)
}
  0xb3   :  { %45 = dma.hbm_to_vmem [thread:$0]  %s3589_s11, 256, %s40_s25, [#allocation3], %s3004_s28, %s3004_s28, %s3005_s29  }
  0xb4   :  { %s3590_s24 = sld [smem:[#allocation42_spill]] }
  0xba   :  { %s2784_s7 = scalar_lea.hbm %s3590_s24, 16 }
  0xbb   :  { %p2785_p2 = scmp.ne.s32.totalorder %s3590_s24, %s2784_s7  ;;  %p2788_p3 = scmp.lt.u32.totalorder %s2784_s7, %s3590_s24 }
  0xbd   :  { %p2790_p4 = pnand %p2788_p3, %p2785_p2 }
  0xbf   :  { %2793 = shalt.err (!%p2790_p4)
}
  0xc0   :  { %s2794_s20 = scalar_lea.vmem %s65_s5, 16  ;;  %s2798_s26 = scalar_lea.vmem %s65_s5, 32 }
  0xc1   :  { %p2795_p5 = scmp.ne.s32.totalorder %s65_s5, %s2794_s20  ;;  %p2799_p6 = scmp.lt.s32.totalorder %s65_s5, %s65_s5 }
  0xc2   :  { %p2800_p7 = scmp.lt.s32.totalorder %s2798_s26, %s2794_s20 }
  0xc4   :  { %p2801_p8 = por %p2800_p7, %p2799_p6 }
  0xc6   :  { %p2802_p9 = pnand %p2801_p8, %p2795_p5 }
  0xc8   :  { %2805 = shalt.err (!%p2802_p9)
}
  0xc9   :  { %67 = dma.hbm_to_vmem [thread:$0]  %s3590_s24, 16, %s65_s5, [#allocation6]  }
  0xca   :  { %s3014_s25 = smov [#allocation10]   ;;  %s3015_s23 = smov [#allocation13]  }
  0xcb   :  { %s86_s11 = sshll.u32 %s3014_s25, 4  ;;  %s108_s21 = sshll.u32 %s3015_s23, 4  ;;  %s87_s11 = int_to_ptr.vmem [resolvable:$true] %s86_s11  ;;  %s109_s21 = int_to_ptr.vmem [resolvable:$true] %s108_s21 }
  0xcc   :  { %s2806_s0 = scalar_lea.hbm %s3560_s4, 16 }
  0xcd   :  { %p2807_p10 = scmp.ne.s32.totalorder %s3560_s4, %s2806_s0  ;;  %p2810_p11 = scmp.lt.u32.totalorder %s2806_s0, %s3560_s4 }
  0xcf   :  { %p2812_p12 = pnand %p2810_p11, %p2807_p10 }
  0xd1   :  { %2815 = shalt.err (!%p2812_p12)
}
  0xd2   :  { %s2816_s5 = scalar_lea.vmem %s87_s11, 16  ;;  %s2820_s18 = scalar_lea.vmem %s87_s11, 32 }
  0xd3   :  { %p2817_p13 = scmp.ne.s32.totalorder %s87_s11, %s2816_s5  ;;  %p2821_p0 = scmp.lt.s32.totalorder %s87_s11, %s87_s11 }
  0xd4   :  { %p2822_p1 = scmp.lt.s32.totalorder %s2820_s18, %s2816_s5 }
  0xd6   :  { %p2823_p2 = por %p2822_p1, %p2821_p0 }
  0xd8   :  { %p2824_p3 = pnand %p2823_p2, %p2817_p13 }
  0xda   :  { %2827 = shalt.err (!%p2824_p3)
}
  0xdb   :  { %89 = dma.hbm_to_vmem [thread:$0]  %s3560_s4, 16, %s87_s11, [#allocation9]  }
  0xdc   :  { %s2828_s22 = scalar_lea.hbm %s3562_s6, 16 }
  0xdd   :  { %p2829_p4 = scmp.ne.s32.totalorder %s3562_s6, %s2828_s22  ;;  %p2832_p5 = scmp.lt.u32.totalorder %s2828_s22, %s3562_s6 }
  0xdf   :  { %p2834_p6 = pnand %p2832_p5, %p2829_p4 }
  0xe1   :  { %2837 = shalt.err (!%p2834_p6)
}
  0xe2   :  { %s2838_s29 = scalar_lea.vmem %s109_s21, 16  ;;  %s2842_s25 = scalar_lea.vmem %s109_s21, 32 }
  0xe3   :  { %p2839_p7 = scmp.ne.s32.totalorder %s109_s21, %s2838_s29  ;;  %p2843_p8 = scmp.lt.s32.totalorder %s109_s21, %s109_s21 }
  0xe4   :  { %p2844_p9 = scmp.lt.s32.totalorder %s2842_s25, %s2838_s29 }
  0xe6   :  { %p2845_p10 = por %p2844_p9, %p2843_p8 }
  0xe8   :  { %p2846_p11 = pnand %p2845_p10, %p2839_p7 }
  0xea   :  { %2849 = shalt.err (!%p2846_p11)
}
  0xeb   :  { %111 = dma.hbm_to_vmem [thread:$0]  %s3562_s6, 16, %s109_s21, [#allocation12]  }
  0xec   :  { %s3016_s23 = smov [#allocation16]   ;;  %s3017_s2 = smov [#allocation19]  }
  0xed   :  { %s130_s30 = sshll.u32 %s3016_s23, 4  ;;  %s152_s0 = sshll.u32 %s3017_s2, 4  ;;  %s131_s30 = int_to_ptr.vmem [resolvable:$true] %s130_s30  ;;  %s153_s0 = int_to_ptr.vmem [resolvable:$true] %s152_s0 }
  0xee   :  { %s2850_s9 = scalar_lea.hbm %s3564_s8, 16 }
  0xef   :  { %p2851_p12 = scmp.ne.s32.totalorder %s3564_s8, %s2850_s9  ;;  %p2854_p13 = scmp.lt.u32.totalorder %s2850_s9, %s3564_s8 }
  0xf1   :  { %p2856_p0 = pnand %p2854_p13, %p2851_p12 }
  0xf3   :  { %2859 = shalt.err (!%p2856_p0)
}
  0xf4   :  { %s2860_s6 = scalar_lea.vmem %s131_s30, 16  ;;  %s2864_s21 = scalar_lea.vmem %s131_s30, 32 }
  0xf5   :  { %p2861_p1 = scmp.ne.s32.totalorder %s131_s30, %s2860_s6  ;;  %p2865_p2 = scmp.lt.s32.totalorder %s131_s30, %s131_s30 }
  0xf6   :  { %p2866_p3 = scmp.lt.s32.totalorder %s2864_s21, %s2860_s6 }
  0xf8   :  { %p2867_p4 = por %p2866_p3, %p2865_p2 }
  0xfa   :  { %p2868_p5 = pnand %p2867_p4, %p2861_p1 }
  0xfc   :  { %2871 = shalt.err (!%p2868_p5)
}
  0xfd   :  { %133 = dma.hbm_to_vmem [thread:$0]  %s3564_s8, 16, %s131_s30, [#allocation15]  }
  0xfe   :  { %s2872_s3 = scalar_lea.hbm %s3566_s10, 16 }
  0xff   :  { %p2873_p6 = scmp.ne.s32.totalorder %s3566_s10, %s2872_s3  ;;  %p2876_p7 = scmp.lt.u32.totalorder %s2872_s3, %s3566_s10 }
 0x101   :  { %p2878_p8 = pnand %p2876_p7, %p2873_p6 }
 0x103   :  { %2881 = shalt.err (!%p2878_p8)
}
 0x104   :  { %s2882_s25 = scalar_lea.vmem %s153_s0, 16  ;;  %s2886_s4 = scalar_lea.vmem %s153_s0, 32 }
 0x105   :  { %p2883_p9 = scmp.ne.s32.totalorder %s153_s0, %s2882_s25  ;;  %p2887_p10 = scmp.lt.s32.totalorder %s153_s0, %s153_s0 }
 0x106   :  { %p2888_p11 = scmp.lt.s32.totalorder %s2886_s4, %s2882_s25 }
 0x108   :  { %p2889_p12 = por %p2888_p11, %p2887_p10 }
 0x10a   :  { %p2890_p13 = pnand %p2889_p12, %p2883_p9 }
 0x10c   :  { %2893 = shalt.err (!%p2890_p13)
}
 0x10d   :  { %155 = dma.hbm_to_vmem [thread:$0]  %s3566_s10, 16, %s153_s0, [#allocation18]  }
 0x10e   :  { %s3018_s23 = smov [#allocation22]   ;;  %s3019_s2 = smov [#allocation25]  }
 0x10f   :  { %s174_s30 = sshll.u32 %s3018_s23, 4  ;;  %s196_s15 = sshll.u32 %s3019_s2, 4  ;;  %s175_s30 = int_to_ptr.vmem [resolvable:$true] %s174_s30  ;;  %s197_s15 = int_to_ptr.vmem [resolvable:$true] %s196_s15 }
 0x110   :  { %s2894_s27 = scalar_lea.hbm %s3568_s12, 16 }
 0x111   :  { %p2895_p0 = scmp.ne.s32.totalorder %s3568_s12, %s2894_s27  ;;  %p2898_p1 = scmp.lt.u32.totalorder %s2894_s27, %s3568_s12 }
 0x113   :  { %p2900_p2 = pnand %p2898_p1, %p2895_p0 }
 0x115   :  { %2903 = shalt.err (!%p2900_p2)
}
 0x116   :  { %s2904_s10 = scalar_lea.vmem %s175_s30, 16  ;;  %s2908_s0 = scalar_lea.vmem %s175_s30, 32 }
 0x117   :  { %p2905_p3 = scmp.ne.s32.totalorder %s175_s30, %s2904_s10  ;;  %p2909_p4 = scmp.lt.s32.totalorder %s175_s30, %s175_s30 }
 0x118   :  { %p2910_p5 = scmp.lt.s32.totalorder %s2908_s0, %s2904_s10 }
 0x11a   :  { %p2911_p6 = por %p2910_p5, %p2909_p4 }
 0x11c   :  { %p2912_p7 = pnand %p2911_p6, %p2905_p3 }
 0x11e   :  { %2915 = shalt.err (!%p2912_p7)
}
 0x11f   :  { %177 = dma.hbm_to_vmem [thread:$0]  %s3568_s12, 16, %s175_s30, [#allocation21]  }
 0x120   :  { %s2916_s22 = scalar_lea.hbm %s3570_s14, 16 }
 0x121   :  { %p2917_p8 = scmp.ne.s32.totalorder %s3570_s14, %s2916_s22  ;;  %p2920_p9 = scmp.lt.u32.totalorder %s2916_s22, %s3570_s14 }
 0x123   :  { %p2922_p10 = pnand %p2920_p9, %p2917_p8 }
 0x125   :  { %2925 = shalt.err (!%p2922_p10)
}
 0x126   :  { %s2926_s29 = scalar_lea.vmem %s197_s15, 16  ;;  %s2930_s25 = scalar_lea.vmem %s197_s15, 32 }
 0x127   :  { %p2927_p11 = scmp.ne.s32.totalorder %s197_s15, %s2926_s29  ;;  %p2931_p12 = scmp.lt.s32.totalorder %s197_s15, %s197_s15 }
 0x128   :  { %p2932_p13 = scmp.lt.s32.totalorder %s2930_s25, %s2926_s29 }
 0x12a   :  { %p2933_p0 = por %p2932_p13, %p2931_p12 }
 0x12c   :  { %p2934_p1 = pnand %p2933_p0, %p2927_p11 }
 0x12e   :  { %2937 = shalt.err (!%p2934_p1)
}
 0x12f   :  { %199 = dma.hbm_to_vmem [thread:$0]  %s3570_s14, 16, %s197_s15, [#allocation24]  }
 0x130   :  { %s3020_s8 = smov [#allocation28]   ;;  %s2938_s2 = scalar_lea.hbm %s3572_s16, 16 }
 0x131   :  { %s218_s11 = sshll.u32 %s3020_s8, 4  ;;  %p2939_p2 = scmp.ne.s32.totalorder %s3572_s16, %s2938_s2  ;;  %s219_s11 = int_to_ptr.vmem [resolvable:$true] %s218_s11 }
 0x132   :  { %p2942_p3 = scmp.lt.u32.totalorder %s2938_s2, %s3572_s16 }
 0x134   :  { %p2944_p4 = pnand %p2942_p3, %p2939_p2 }
 0x136   :  { %2947 = shalt.err (!%p2944_p4)
}
 0x137   :  { %s2948_s18 = scalar_lea.vmem %s219_s11, 16  ;;  %s2952_s14 = scalar_lea.vmem %s219_s11, 32 }
 0x138   :  { %p2949_p5 = scmp.ne.s32.totalorder %s219_s11, %s2948_s18  ;;  %p2953_p6 = scmp.lt.s32.totalorder %s219_s11, %s219_s11 }
 0x139   :  { %p2954_p7 = scmp.lt.s32.totalorder %s2952_s14, %s2948_s18 }
 0x13b   :  { %p2955_p8 = por %p2954_p7, %p2953_p6 }
 0x13d   :  { %p2956_p9 = pnand %p2955_p8, %p2949_p5 }
 0x13f   :  { %2959 = shalt.err (!%p2956_p9)
}
 0x140   :  { %221 = dma.hbm_to_vmem [thread:$0]  %s3572_s16, 16, %s219_s11, [#allocation27]  }
 0x141   :  { %2982 = dma.done.wait [#allocation3], 256  }
 0x142   :  { %2983 = vsyncadd [#allocation3], 4294967040 }
 0x143   :  { %2984 = dma.done.wait [#allocation6], 2064  }
 0x144   :  { %2985 = vsyncadd [#allocation6], 4294965232 }
 0x145   :  { %2986 = dma.done.wait [#allocation9], 2064  }
 0x146   :  { %2987 = vsyncadd [#allocation9], 4294965232 }
 0x147   :  { %2988 = dma.done.wait [#allocation12], 1040  }
 0x148   :  { %2989 = vsyncadd [#allocation12], 4294966256 }
 0x149   :  { %2990 = dma.done.wait [#allocation15], 2064  }
 0x14a   :  { %2991 = vsyncadd [#allocation15], 4294965232 }
 0x14b   :  { %2992 = dma.done.wait [#allocation18], 2064  }
 0x14c   :  { %2993 = vsyncadd [#allocation18], 4294965232 }
 0x14d   :  { %2994 = dma.done.wait [#allocation21], 1040  }
 0x14e   :  { %2995 = vsyncadd [#allocation21], 4294966256 }
 0x14f   :  { %2996 = dma.done.wait [#allocation24], 2064  }
 0x150   :  { %2997 = vsyncadd [#allocation24], 4294965232 }
 0x151   :  { %2998 = dma.done.wait [#allocation27], 2064  }
 0x152   :  { %2999 = vsyncadd [#allocation27], 4294965232  ;;  %v2462_v0 = vld [vmem:[#allocation5 + $0x40] sm:$0xff]   ;;  %v2464_v2 = vld [vmem:[#allocation5 + $0x48] sm:$0xff]   ;;  %v290_v6 = vlaneseq  ;;  %vm3021_vm2 = vmmov 1   ;;  %vm1664_vm12 = vcmask 1040384  }
 0x153   :  { %v2463_v1 = vld [vmem:[#allocation5] sm:$0xff]   ;;  %2185 = vmatprep.subr.bf16.mxu0 %v2462_v0  ;;  %v2465_v3 = vld [vmem:[#allocation5 + $0x8] sm:$0xff]   ;;  %v2466_v4 = vld [vmem:[#allocation5 + $0x50] sm:$0xff]   ;;  %vm1665_vm13 = vsmask.f32 256  ;;  %s3601_s8 = sld [smem:[#allocation44_spill]] }
 0x154   :  { %2186 = vmatpush3.bf16.msra.mxu0 %v2463_v1  ;;  %v2467_v5 = vld [vmem:[#allocation5 + $0x10] sm:$0xff]   ;;  %v2468_v7 = vld [vmem:[#allocation5 + $0x58] sm:$0xff]   ;;  %v3387_v9 = vshrl.u32 %v290_v6, 7  ;;  %v2470_v10 = vld [vmem:[#allocation5 + $0x60] sm:$0xff]   ;;  %s3025_s11 = smov [#allocation29]  }
 0x155   :  { %2187 = vmatprep.subr.bf16.mxu0 %v2464_v2  ;;  %v2469_v8 = vld [vmem:[#allocation5 + $0x18] sm:$0xff]   ;;  %v2471_v11 = vld [vmem:[#allocation5 + $0x20] sm:$0xff]   ;;  %v2472_v13 = vld [vmem:[#allocation5 + $0x68] sm:$0xff]   ;;  %s2001_s23 = sshll.u32 %s3025_s11, 4  ;;  %s2002_s23 = int_to_ptr.vmem [resolvable:$true] %s2001_s23 }
 0x156   :  { %v3390_v12 = vand.u32 15, %v3387_v9  ;;  %v278_v14 = vld [vmem:[#allocation2] sm:$0xff]   ;;  %v3392_v15 = vld [vmem:[#allocation2 + $0x8] sm:$0xff]   ;;  %v298_v16 = vadd.s32 16, %v3387_v9  ;;  %v2473_v17 = vld [vmem:[#allocation5 + $0x28] sm:$0xff]   ;;  %vm292_vm0 = vcmp.lt.s32.totalorder %v3387_v9, 1  ;;  %p2965_p11 = scmp.lt.s32.totalorder %s2002_s23, %s2002_s23 }
 0x157   :  { %v282_v18 = vunpack.c.l.bf16 %v278_v14  ;;  %v283_v19 = vunpack.c.h.bf16 %v278_v14  ;;  %v2480_v20 = vld [vmem:[#allocation8 + $0x40] sm:$0xff]   ;;  %v2474_v21 = vld [vmem:[#allocation5 + $0x70] sm:$0xff]   ;;  %537 = vmatprep.mubr.bf16.mxu0 %v278_v14  ;;  %v285_v22 = vunpack.c.h.bf16 %v3392_v15  ;;  %v284_v24 = vunpack.c.l.bf16 %v3392_v15  ;;  %v2476_v29 = vld [vmem:[#allocation5 + $0x78] sm:$0xff]   ;;  %s2960_s30 = scalar_lea.vmem %s2002_s23, 32 }
 0x158   :  { %2188 = vmatpush3.bf16.msra.mxu0 %v2465_v3  ;;  %vm348_vm1 = vcmp.ge.s32.totalorder %v3390_v12, 1  ;;  %v2481_v23 = vld [vmem:[#allocation8] sm:$0xff]   ;;  %v3399_v25 = vand.u32 15, %v298_v16  ;;  %2213 = vmatprep.subr.bf16.mxu1 %v2480_v20  ;;  %v2482_v26 = vld [vmem:[#allocation8 + $0x48] sm:$0xff]   ;;  %v2485_v33 = vld [vmem:[#allocation8 + $0x50] sm:$0xff]   ;;  %vm900_vm6 = vcmp.lt.s32.totalorder %v3387_v9, 2  ;;  %p2961_p10 = scmp.ne.s32.totalorder %s2002_s23, %s2960_s30  ;;  %p2966_p12 = scmp.lt.s32.totalorder %s2960_s30, %s2960_s30 }
 0x159   :  { %2189 = vmatprep.subr.bf16.mxu0 %v2466_v4  ;;  %v2475_v27 = vld [vmem:[#allocation5 + $0x30] sm:$0xff]   ;;  %v286_v28 = vrot.slane %v282_v18, 7  ;;  %2214 = vmatpush3.bf16.msra.mxu1 %v2481_v23  ;;  %v287_v30 = vrot.slane %v283_v19, 7  ;;  %v289_v32 = vrot.slane %v285_v22, 7  ;;  %vm3404_vm3 = vmpackc.low %vm3021_vm2, %vm348_vm1  ;;  %v288_v35 = vrot.slane %v284_v24, 7  ;;  %v2477_v36 = vld [vmem:[#allocation5 + $0x38] sm:$0xff]  }
 0x15a   :  { %2215 = vmatprep.subr.bf16.mxu1 %v2482_v26  ;;  %v2484_v31 = vld [vmem:[#allocation8 + $0x8] sm:$0xff]   ;;  %vm350_vm4 = vcmp.ge.s32.totalorder %v3399_v25, 1  ;;  %v2487_v46 = vld [vmem:[#allocation8 + $0x10] sm:$0xff]   ;;  %v2488_v47 = vld [vmem:[#allocation8 + $0x58] sm:$0xff]   ;;  %vm905_vm7 = vcmp.ge.s32.totalorder %v3390_v12, 2  ;;  %vm907_vm9 = vcmp.ge.s32.totalorder %v3399_v25, 2  ;;  %p2967_p13 = por %p2966_p12, %p2965_p11 }
 0x15b   :  { %v2483_v37 = vld [vmem:[#allocation11] sm:$0xff]   ;;  %v295_v38 = vsel %vm292_vm0, %v286_v28, %v287_v30  ;;  %v296_v39 = vsel %vm292_vm0, %v289_v32, %v286_v28  ;;  %v2486_v41 = vld [vmem:[#allocation11 + $0x8] sm:$0xff]   ;;  %vm3414_vm5 = vmpackc.low %vm3021_vm2, %vm350_vm4  ;;  %v293_v43 = vsel %vm292_vm0, %v288_v35, %v289_v32  ;;  %v294_v44 = vsel %vm292_vm0, %v287_v30, %v288_v35 }
 0x15c   :  { %2190 = vmatpush3.bf16.msra.mxu0 %v2467_v5  ;;  %v2041_v40 = vpack.c.bf16 %v295_v38, %v296_v39  ;;  %v2044_v45 = vpack.c.bf16 %v293_v43, %v294_v44  ;;  %v2489_v48 = vld [vmem:[#allocation11 + $0x10] sm:$0xff]   ;;  %v2491_v50 = vld [vmem:[#allocation8 + $0x60] sm:$0xff]   ;;  %v2494_v53 = vld [vmem:[#allocation8 + $0x68] sm:$0xff]   ;;  %vm1445_vm11 = vcmp.lt.s32.totalorder %v3387_v9, 4  ;;  %vm1450_vm14 = vcmp.ge.s32.totalorder %v3390_v12, 4  ;;  %p2968_p0 = pnand %p2967_p13, %p2961_p10 }
 0x15d   :  { %2191 = vmatprep.subr.bf16.mxu0 %v2468_v7  ;;  %2216 = vmatpush3.bf16.msra.mxu1 %v2484_v31  ;;  %v2490_v49 = vld [vmem:[#allocation8 + $0x18] sm:$0xff]   ;;  %v2493_v52 = vld [vmem:[#allocation8 + $0x20] sm:$0xff]   ;;  %v2496_v55 = vld [vmem:[#allocation8 + $0x28] sm:$0xff]   ;;  %vm1452_vm1 = vcmp.ge.s32.totalorder %v3399_v25, 4 }
 0x15e   :  { %2217 = vmatprep.subr.bf16.mxu1 %v2485_v33  ;;  %v2492_v51 = vld [vmem:[#allocation11 + $0x18] sm:$0xff]   ;;  %v2495_v54 = vld [vmem:[#allocation11 + $0x20] sm:$0xff]   ;;  %v2497_v56 = vld [vmem:[#allocation8 + $0x70] sm:$0xff]  }
 0x15f   :  { %v2498_v57 = vld [vmem:[#allocation11 + $0x28] sm:$0xff]   ;;  %v2500_v59 = vld [vmem:[#allocation8 + $0x78] sm:$0xff]   ;;  %vm3455_vm8 = vmpackc.low %vm3021_vm2, %vm905_vm7 }
 0x160   :  { %2192 = vmatpush3.bf16.msra.mxu0 %v2469_v8  ;;  %v2499_v58 = vld [vmem:[#allocation8 + $0x30] sm:$0xff]   ;;  %v2502_v61 = vld [vmem:[#allocation8 + $0x38] sm:$0xff]   ;;  %v2504_v63 = vld [vmem:[#allocation14 + $0x40] sm:$0xff]  }
 0x161   :  { %2193 = vmatprep.subr.bf16.mxu0 %v2470_v10  ;;  %2218 = vmatpush3.bf16.msra.mxu1 %v2487_v46  ;;  %v2501_v60 = vld [vmem:[#allocation11 + $0x30] sm:$0xff]   ;;  %v2503_v62 = vld [vmem:[#allocation11 + $0x38] sm:$0xff]   ;;  %v2505_v35 = vld [vmem:[#allocation14] sm:$0xff]  }
 0x162   :  { %2219 = vmatprep.subr.bf16.mxu1 %v2488_v47  ;;  %v2023_v2 = vld [vmem:[#allocation7] ss:$0 sm:$0xff]  ;;  %v2506_v38 = vld [vmem:[#allocation14 + $0x48] sm:$0xff]   ;;  %vm3466_vm10 = vmpackc.low %vm3021_vm2, %vm907_vm9 }
 0x163   :  { %v2507_v39 = vld [vmem:[#allocation14 + $0x8] sm:$0xff]   ;;  %v2510_v44 = vld [vmem:[#allocation14 + $0x58] sm:$0xff]   ;;  %vm3496_vm15 = vmand %vm1664_vm12, %vm1665_vm13 }
 0x164   :  { %2194 = vmatpush3.bf16.msra.mxu0 %v2471_v11  ;;  %v2511_v46 = vld [vmem:[#allocation14 + $0x18] sm:$0xff]   ;;  %v2515_v42 = vld [vmem:[#allocation14 + $0x28] sm:$0xff]  }
 0x165   :  { %2195 = vmatprep.subr.bf16.mxu0 %v2472_v13  ;;  %2220 = vmatpush3.bf16.msra.mxu1 %v2490_v49  ;;  %v2513_v49 = vld [vmem:[#allocation14 + $0x20] sm:$0xff]   ;;  %v2572_v25 = vld [vmem:[#allocation26 + $0x70] sm:$0xff]  }
 0x166   :  { %2221 = vmatprep.subr.bf16.mxu1 %v2491_v50  ;;  %v2514_v50 = vld [vmem:[#allocation14 + $0x68] sm:$0xff]  }
 0x168   :  { %2196 = vmatpush3.bf16.msra.mxu0 %v2473_v17 }
 0x169   :  { %2197 = vmatprep.subr.bf16.mxu0 %v2474_v21  ;;  %2222 = vmatpush3.bf16.msra.mxu1 %v2493_v52  ;;  %v2517_v52 = vld [vmem:[#allocation14 + $0x30] sm:$0xff]  }
 0x16a   :  { %2223 = vmatprep.subr.bf16.mxu1 %v2494_v53  ;;  %v2518_v53 = vld [vmem:[#allocation14 + $0x78] sm:$0xff]  }
 0x16c   :  { %2198 = vmatpush3.bf16.msra.mxu0 %v2475_v27 }
 0x16d   :  { %2199 = vmatprep.subr.bf16.mxu0 %v2476_v29  ;;  %2224 = vmatpush3.bf16.msra.mxu1 %v2496_v55  ;;  %v3442_v55 = vld [vmem:[#allocation20] sm:$0xff]  }
 0x16e   :  { %2225 = vmatprep.subr.bf16.mxu1 %v2497_v56  ;;  %v2528_v56 = vld [vmem:[#allocation17 + $0x40] sm:$0xff]  }
 0x170   :  { %2200 = vmatpush3.bf16.msra.mxu0 %v2477_v36 }
 0x171   :  { %2376 = vmatprep.subr.bf16.mxu0 %v2483_v37  ;;  %2226 = vmatpush3.bf16.msra.mxu1 %v2499_v58  ;;  %v2530_v58 = vld [vmem:[#allocation17 + $0x48] sm:$0xff]  }
 0x172   :  { %2227 = vmatprep.subr.bf16.mxu1 %v2500_v59  ;;  %v2531_v59 = vld [vmem:[#allocation17 + $0x8] sm:$0xff]  }
 0x173   :  { %2042 = vmatmul.mubr.msk.bf16.vlgmr.msra.gmra.mrb[0].mxu0 %vm3404_vm3, %v2041_v40  ;;  %v2508_v40 = vld [vmem:[#allocation14 + $0x50] sm:$0xff]  }
 0x174   :  { %545 = vmatprep.mubr.bf16.mxu0 %v3392_v15  ;;  %2377 = vmatpush3.bf16.msra.mxu0 %v2483_v37 }
 0x175   :  { %2378 = vmatprep.subr.bf16.mxu0 %v2486_v41  ;;  %2228 = vmatpush3.bf16.msra.mxu1 %v2502_v61 }
 0x176   :  { %2251 = vmatprep.subr.bf16.mxu1 %v2504_v63 }
 0x178   :  { %2379 = vmatpush3.bf16.msra.mxu0 %v2486_v41  ;;  %v2509_v41 = vld [vmem:[#allocation14 + $0x10] sm:$0xff]  }
 0x179   :  { %2380 = vmatprep.subr.bf16.mxu0 %v2489_v48 }
 0x17b   :  { %2045 = vmatmul.mubr.msk.bf16.gmra.mrb[4].mxu0 %vm3414_vm5, %v2044_v45 }
 0x17c   :  { %2392 = vmatprep.mubr.bf16.mxu0 %v278_v14  ;;  %2381 = vmatpush3.bf16.msra.mxu0 %v2489_v48  ;;  %v2512_v48 = vld [vmem:[#allocation14 + $0x60] sm:$0xff]  }
 0x17d   :  { %2382 = vmatprep.subr.bf16.mxu0 %v2492_v51 }
 0x180   :  { %2383 = vmatpush3.bf16.msra.mxu0 %v2492_v51  ;;  %v2516_v51 = vld [vmem:[#allocation14 + $0x70] sm:$0xff]  }
 0x181   :  { %2384 = vmatprep.subr.bf16.mxu0 %v2495_v54 }
 0x184   :  { %2385 = vmatpush3.bf16.msra.mxu0 %v2495_v54  ;;  %v2519_v54 = vld [vmem:[#allocation14 + $0x38] sm:$0xff]  }
 0x185   :  { %2386 = vmatprep.subr.bf16.mxu0 %v2498_v57 }
 0x188   :  { %2387 = vmatpush3.bf16.msra.mxu0 %v2498_v57  ;;  %v2529_v57 = vld [vmem:[#allocation17] sm:$0xff]  }
 0x189   :  { %2388 = vmatprep.subr.bf16.mxu0 %v2501_v60 }
 0x18c   :  { %2389 = vmatpush3.bf16.msra.mxu0 %v2501_v60  ;;  %v2532_v60 = vld [vmem:[#allocation17 + $0x50] sm:$0xff]  }
 0x18d   :  { %2390 = vmatprep.subr.bf16.mxu0 %v2503_v62 }
 0x190   :  { %2391 = vmatpush3.bf16.msra.mxu0 %v2503_v62  ;;  %v2046_v62 = vld [vmem:[#allocation10] ss:$0 sm:$0xff] }
 0x191   :  { %2279 = vmatprep.subr.bf16.mxu0 %v2528_v56  ;;  %v2534_v56 = vld [vmem:[#allocation17 + $0x58] sm:$0xff]  }
 0x193   :  { %2393 = vmatmul.mubr.bf16.vlgmr.msra.gmra.mrb[8].mxu0 %v3392_v15 }
 0x194   :  { %2280 = vmatpush3.bf16.msra.mxu0 %v2529_v57  ;;  %v2535_v57 = vld [vmem:[#allocation17 + $0x18] sm:$0xff]  }
 0x195   :  { %2281 = vmatprep.subr.bf16.mxu0 %v2530_v58  ;;  %v2536_v58 = vld [vmem:[#allocation17 + $0x60] sm:$0xff]  }
 0x198   :  { %2282 = vmatpush3.bf16.msra.mxu0 %v2531_v59  ;;  %v2537_v59 = vld [vmem:[#allocation17 + $0x20] sm:$0xff]  }
 0x199   :  { %2283 = vmatprep.subr.bf16.mxu0 %v2532_v60  ;;  %v2538_v60 = vld [vmem:[#allocation17 + $0x68] sm:$0xff]  }
 0x246   :  { %v2201_v0 = vpop.f32.mrb[0].mxu0 }
 0x247   :  { %v2202_v1 = vpop.f32.mrb[1].mxu0 }
 0x248   :  { %v2203_v3 = vadd.f32 %v2202_v1, %v2201_v0  ;;  %v2204_v4 = vpop.f32.mrb[2].mxu0  ;;  %v2069_v0 = vld [vmem:[#allocation13] ss:$0 sm:$0xff] }
 0x249   :  { %v2205_v5 = vpop.f32.mrb[3].mxu0 }
 0x24a   :  { %v2206_v6 = vadd.f32 %v2205_v5, %v2204_v4  ;;  %v540_v7 = vadd.f32 %v2203_v3, %v2023_v2 }
 0x24c   :  { %v543_v8 = vadd.f32 %v2206_v6, %v2023_v2  ;;  %v554_v10 = vmax.f32 %v540_v7, 0.0 }
 0x24e   :  { %v2207_v11 = vpop.f32.mrb[4].mxu0  ;;  %v555_v13 = vmax.f32 %v543_v8, 0.0  ;;  %v558_v18 = vrot.slane %v554_v10, 7 }
 0x24f   :  { %v2208_v14 = vpop.f32.mrb[5].mxu0 }
 0x250   :  { %v2209_v16 = vadd.f32 %v2208_v14, %v2207_v11  ;;  %v2210_v17 = vpop.f32.mrb[6].mxu0  ;;  %v559_v19 = vrot.slane %v555_v13, 7  ;;  %v572_v15 = vpack.c.bf16 %v555_v13, %v554_v10 }
 0x251   :  { %v2211_v20 = vpop.f32.mrb[7].mxu0 }
 0x252   :  { %v548_v21 = vadd.f32 %v2209_v16, %v2023_v2  ;;  %v2212_v22 = vadd.f32 %v2211_v20, %v2210_v17  ;;  %741 = vmatprep.mubr.bf16.mxu1 %v572_v15  ;;  %v564_v23 = vsel %vm292_vm0, %v558_v18, %v559_v19 }
 0x254   :  { %v556_v24 = vmax.f32 %v548_v21, 0.0  ;;  %v551_v26 = vadd.f32 %v2212_v22, %v2023_v2 }
 0x256   :  { %v560_v27 = vrot.slane %v556_v24, 7  ;;  %v557_v28 = vmax.f32 %v551_v26, 0.0 }
 0x258   :  { %v561_v29 = vrot.slane %v557_v28, 7  ;;  %v573_v30 = vpack.c.bf16 %v557_v28, %v556_v24  ;;  %v563_v31 = vsel %vm292_vm0, %v559_v19, %v560_v27 }
 0x25a   :  { %v565_v32 = vsel %vm292_vm0, %v561_v29, %v558_v18  ;;  %v562_v33 = vsel %vm292_vm0, %v560_v27, %v561_v29  ;;  %vm2150_vm0 = vmpackc.low %vm3021_vm2, %vm1450_vm14 }
 0x25b   :  { %v2064_v36 = vpack.c.bf16 %v564_v23, %v565_v32  ;;  %v2067_v37 = vpack.c.bf16 %v562_v33, %v563_v31 }
 0x25d   :  { %2065 = vmatmul.mubr.msk.bf16.vlgmr.msra.gmra.mrb[0].mxu1 %vm3404_vm3, %v2064_v36  ;;  %vm2153_vm3 = vmpackc.low %vm3021_vm2, %vm1452_vm1  ;;  %vm3023_vm2 = vmmov 0  }
 0x25e   :  { %749 = vmatprep.mubr.bf16.mxu1 %v573_v30  ;;  %2252 = vmatpush3.bf16.msra.mxu1 %v2505_v35 }
 0x25f   :  { %2253 = vmatprep.subr.bf16.mxu1 %v2506_v38 }
 0x262   :  { %2254 = vmatpush3.bf16.msra.mxu1 %v2507_v39 }
 0x263   :  { %2255 = vmatprep.subr.bf16.mxu1 %v2508_v40 }
 0x265   :  { %2068 = vmatmul.mubr.msk.bf16.gmra.mrb[4].mxu1 %vm3414_vm5, %v2067_v37 }
 0x266   :  { %2256 = vmatpush3.bf16.msra.mxu1 %v2509_v41  ;;  %v2394_v43 = vpop.f32.mrb[8].mxu0 }
 0x267   :  { %v867_v45 = vpop.f32.mrb[9].mxu0  ;;  %2257 = vmatprep.subr.bf16.mxu1 %v2510_v44  ;;  %v876_v21 = vadd.f32 %v2394_v43, %v2069_v0 }
 0x268   :  { %v3440_v47 = vpop.f32.mrb[10].mxu0  ;;  %v868_v6 = vadd.f32 %v2069_v0, %v867_v45  ;;  %v2550_v45 = vld [vmem:[#allocation23 + $0x58] sm:$0xff]  }
 0x269   :  { %v870_v34 = vpop.f32.mrb[11].mxu0  ;;  %v879_v31 = vadd.f32 %v3440_v47, %v2069_v0 }
 0x26a   :  { %2258 = vmatpush3.bf16.msra.mxu1 %v2511_v46  ;;  %v871_v10 = vadd.f32 %v2069_v0, %v870_v34  ;;  %v2521_v34 = vld [vmem:[#allocation20 + $0x8] sm:$0xff]   ;;  %v2542_v0 = vld [vmem:[#allocation17 + $0x78] sm:$0xff]  }
 0x26b   :  { %2259 = vmatprep.subr.bf16.mxu1 %v2512_v48 }
 0x26e   :  { %2260 = vmatpush3.bf16.msra.mxu1 %v2513_v49  ;;  %v2522_v49 = vld [vmem:[#allocation20 + $0x10] sm:$0xff]  }
 0x26f   :  { %2261 = vmatprep.subr.bf16.mxu1 %v2514_v50  ;;  %v2554_v50 = vld [vmem:[#allocation23 + $0x68] sm:$0xff]  }
 0x272   :  { %2262 = vmatpush3.bf16.msra.mxu1 %v2515_v42  ;;  %v2523_v42 = vld [vmem:[#allocation20 + $0x18] sm:$0xff]  }
 0x273   :  { %2263 = vmatprep.subr.bf16.mxu1 %v2516_v51  ;;  %v2524_v51 = vld [vmem:[#allocation20 + $0x20] sm:$0xff]  }
 0x276   :  { %2264 = vmatpush3.bf16.msra.mxu1 %v2517_v52  ;;  %v2525_v52 = vld [vmem:[#allocation20 + $0x28] sm:$0xff]  }
 0x277   :  { %2265 = vmatprep.subr.bf16.mxu1 %v2518_v53  ;;  %v2526_v53 = vld [vmem:[#allocation20 + $0x30] sm:$0xff]  }
 0x27a   :  { %2266 = vmatpush3.bf16.msra.mxu1 %v2519_v54  ;;  %v2527_v54 = vld [vmem:[#allocation20 + $0x38] sm:$0xff]  }
 0x27b   :  { %2396 = vmatprep.subr.bf16.mxu1 %v3442_v55 }
 0x330   :  { %v2229_v61 = vpop.f32.mrb[0].mxu1 }
 0x331   :  { %v2230_v63 = vpop.f32.mrb[1].mxu1 }
 0x332   :  { %v2231_v1 = vadd.f32 %v2230_v63, %v2229_v61  ;;  %v2232_v2 = vpop.f32.mrb[2].mxu1  ;;  %v2539_v61 = vld [vmem:[#allocation17 + $0x28] sm:$0xff]   ;;  %v2541_v63 = vld [vmem:[#allocation17 + $0x30] sm:$0xff]  }
 0x333   :  { %v2233_v3 = vpop.f32.mrb[3].mxu1 }
 0x334   :  { %v744_v4 = vadd.f32 %v2231_v1, %v2046_v62  ;;  %v2234_v5 = vadd.f32 %v2233_v3, %v2232_v2  ;;  %v2543_v1 = vld [vmem:[#allocation17 + $0x38] sm:$0xff]   ;;  %v2544_v2 = vld [vmem:[#allocation23 + $0x40] sm:$0xff]  }
 0x336   :  { %v758_v7 = vmax.f32 %v744_v4, 0.0  ;;  %v747_v8 = vadd.f32 %v2234_v5, %v2046_v62  ;;  %v2078_v4 = vld [vmem:[#allocation16] ss:$0 sm:$0xff] }
 0x338   :  { %v759_v11 = vmax.f32 %v747_v8, 0.0  ;;  %v882_v13 = vadd.f32 %v868_v6, %v758_v7  ;;  %v2235_v14 = vpop.f32.mrb[4].mxu1 }
 0x339   :  { %v2236_v16 = vpop.f32.mrb[5].mxu1 }
 0x33a   :  { %v886_v17 = vmax.f32 %v882_v13, 0.0  ;;  %v883_v18 = vadd.f32 %v871_v10, %v759_v11  ;;  %v2237_v19 = vadd.f32 %v2236_v16, %v2235_v14  ;;  %v2238_v15 = vpop.f32.mrb[6].mxu1 }
 0x33b   :  { %v2239_v20 = vpop.f32.mrb[7].mxu1 }
 0x33c   :  { %v887_v22 = vmax.f32 %v883_v18, 0.0  ;;  %v752_v23 = vadd.f32 %v2237_v19, %v2046_v62  ;;  %v2240_v24 = vadd.f32 %v2239_v20, %v2238_v15  ;;  %v896_v26 = vrot.slane %v886_v17, 6 }
 0x33e   :  { %v897_v27 = vrot.slane %v887_v22, 6  ;;  %v760_v28 = vmax.f32 %v752_v23, 0.0  ;;  %v755_v29 = vadd.f32 %v2240_v24, %v2046_v62  ;;  %v890_v30 = vpack.c.bf16 %v887_v22, %v886_v17  ;;  %v2540_v62 = vld [vmem:[#allocation17 + $0x70] sm:$0xff]  }
 0x340   :  { %v903_v32 = vsel %vm900_vm6, %v896_v26, %v897_v27  ;;  %v884_v33 = vadd.f32 %v876_v21, %v760_v28  ;;  %v761_v35 = vmax.f32 %v755_v29, 0.0  ;;  %1082 = vmatprep.mubr.bf16.mxu1 %v890_v30 }
 0x342   :  { %v888_v36 = vmax.f32 %v884_v33, 0.0  ;;  %v885_v37 = vadd.f32 %v879_v31, %v761_v35 }
 0x344   :  { %v898_v38 = vrot.slane %v888_v36, 6  ;;  %v889_v39 = vmax.f32 %v885_v37, 0.0 }
 0x346   :  { %v899_v40 = vrot.slane %v889_v39, 6  ;;  %v891_v41 = vpack.c.bf16 %v889_v39, %v888_v36  ;;  %v902_v43 = vsel %vm900_vm6, %v897_v27, %v898_v38 }
 0x348   :  { %v904_v44 = vsel %vm900_vm6, %v899_v40, %v896_v26  ;;  %v901_v46 = vsel %vm900_vm6, %v898_v38, %v899_v40  ;;  %v2545_v38 = vld [vmem:[#allocation23] sm:$0xff]  }
 0x349   :  { %v2096_v47 = vpack.c.bf16 %v903_v32, %v904_v44  ;;  %v2099_v48 = vpack.c.bf16 %v901_v46, %v902_v43 }
 0x34b   :  { %2097 = vmatmul.mubr.msk.bf16.vlgmr.msra.gmra.mrb[8].mxu1 %vm3455_vm8, %v2096_v47 }
 0x34c   :  { %2397 = vmatpush3.bf16.msra.mxu1 %v3442_v55  ;;  %1090 = vmatprep.mubr.bf16.mxu1 %v891_v41  ;;  %v2533_v55 = vld [vmem:[#allocation17 + $0x10] sm:$0xff]  }
 0x34d   :  { %2398 = vmatprep.subr.bf16.mxu1 %v2521_v34  ;;  %2284 = vmatpush3.bf16.msra.mxu0 %v2533_v55  ;;  %v2557_v55 = vld [vmem:[#allocation23 + $0x30] sm:$0xff]  }
 0x34e   :  { %2285 = vmatprep.subr.bf16.mxu0 %v2534_v56  ;;  %v2558_v56 = vld [vmem:[#allocation23 + $0x78] sm:$0xff]  }
 0x350   :  { %2399 = vmatpush3.bf16.msra.mxu1 %v2521_v34  ;;  %v2547_v34 = vld [vmem:[#allocation23 + $0x8] sm:$0xff]  }
 0x351   :  { %2400 = vmatprep.subr.bf16.mxu1 %v2522_v49  ;;  %2286 = vmatpush3.bf16.msra.mxu0 %v2535_v57  ;;  %v2559_v57 = vld [vmem:[#allocation23 + $0x38] sm:$0xff]  }
 0x352   :  { %2287 = vmatprep.subr.bf16.mxu0 %v2536_v58  ;;  %v2560_v58 = vld [vmem:[#allocation26 + $0x40] sm:$0xff]  }
 0x353   :  { %2100 = vmatmul.mubr.msk.bf16.gmra.mrb[12].mxu1 %vm3466_vm10, %v2099_v48  ;;  %v2548_v48 = vld [vmem:[#allocation23 + $0x50] sm:$0xff]  }
 0x354   :  { %2401 = vmatpush3.bf16.msra.mxu1 %v2522_v49  ;;  %2412 = vmatprep.mubr.bf16.mxu1 %v890_v30  ;;  %v2549_v49 = vld [vmem:[#allocation23 + $0x10] sm:$0xff]  }
 0x355   :  { %2402 = vmatprep.subr.bf16.mxu1 %v2523_v42  ;;  %2288 = vmatpush3.bf16.msra.mxu0 %v2537_v59  ;;  %v2561_v59 = vld [vmem:[#allocation26] sm:$0xff]  }
 0x356   :  { %2289 = vmatprep.subr.bf16.mxu0 %v2538_v60  ;;  %v2562_v60 = vld [vmem:[#allocation26 + $0x48] sm:$0xff]  }
 0x358   :  { %2403 = vmatpush3.bf16.msra.mxu1 %v2523_v42  ;;  %v2551_v42 = vld [vmem:[#allocation23 + $0x18] sm:$0xff]  }
 0x359   :  { %2404 = vmatprep.subr.bf16.mxu1 %v2524_v51  ;;  %2290 = vmatpush3.bf16.msra.mxu0 %v2539_v61  ;;  %v2563_v61 = vld [vmem:[#allocation26 + $0x8] sm:$0xff]  }
 0x35a   :  { %2291 = vmatprep.subr.bf16.mxu0 %v2540_v62 }
 0x35c   :  { %2405 = vmatpush3.bf16.msra.mxu1 %v2524_v51  ;;  %v2552_v51 = vld [vmem:[#allocation23 + $0x60] sm:$0xff]  }
 0x35d   :  { %2406 = vmatprep.subr.bf16.mxu1 %v2525_v52  ;;  %2292 = vmatpush3.bf16.msra.mxu0 %v2541_v63  ;;  %v2101_v63 = vld [vmem:[#allocation19] ss:$0 sm:$0xff] }
 0x35e   :  { %2293 = vmatprep.subr.bf16.mxu0 %v2542_v0 }
 0x360   :  { %2407 = vmatpush3.bf16.msra.mxu1 %v2525_v52  ;;  %v2553_v52 = vld [vmem:[#allocation23 + $0x20] sm:$0xff]  }
 0x361   :  { %2408 = vmatprep.subr.bf16.mxu1 %v2526_v53  ;;  %2294 = vmatpush3.bf16.msra.mxu0 %v2543_v1 }
 0x362   :  { %2317 = vmatprep.subr.bf16.mxu0 %v2544_v2 }
 0x364   :  { %2409 = vmatpush3.bf16.msra.mxu1 %v2526_v53  ;;  %v2555_v53 = vld [vmem:[#allocation23 + $0x28] sm:$0xff]  }
 0x365   :  { %2410 = vmatprep.subr.bf16.mxu1 %v2527_v54 }
 0x368   :  { %2411 = vmatpush3.bf16.msra.mxu1 %v2527_v54  ;;  %v2556_v54 = vld [vmem:[#allocation23 + $0x70] sm:$0xff]  }
 0x369   :  { %2345 = vmatprep.subr.bf16.mxu1 %v2560_v58  ;;  %v2571_v58 = vld [vmem:[#allocation26 + $0x28] sm:$0xff]  }
 0x36b   :  { %2413 = vmatmul.mubr.bf16.vlgmr.msra.gmra.mrb[16].mxu1 %v891_v41  ;;  %v2546_v41 = vld [vmem:[#allocation23 + $0x48] sm:$0xff]  }
 0x36c   :  { %2346 = vmatpush3.bf16.msra.mxu1 %v2561_v59  ;;  %v2573_v59 = vld [vmem:[#allocation26 + $0x30] sm:$0xff]  }
 0x36d   :  { %2347 = vmatprep.subr.bf16.mxu1 %v2562_v60  ;;  %v2574_v60 = vld [vmem:[#allocation26 + $0x78] sm:$0xff]  }
 0x370   :  { %2348 = vmatpush3.bf16.msra.mxu1 %v2563_v61  ;;  %v2575_v61 = vld [vmem:[#allocation26 + $0x38] sm:$0xff]  }
 0x41e   :  { %v2267_v3 = vpop.f32.mrb[8].mxu1 }
 0x41f   :  { %v2268_v5 = vpop.f32.mrb[9].mxu1 }
 0x420   :  { %v2269_v6 = vadd.f32 %v2268_v5, %v2267_v3  ;;  %v2270_v7 = vpop.f32.mrb[10].mxu1  ;;  %v2124_v3 = vld [vmem:[#allocation22] ss:$0 sm:$0xff] }
 0x421   :  { %v2271_v8 = vpop.f32.mrb[11].mxu1 }
 0x422   :  { %v1085_v10 = vadd.f32 %v2269_v6, %v2078_v4  ;;  %v2272_v11 = vadd.f32 %v2271_v8, %v2270_v7 }
 0x424   :  { %v1099_v13 = vmax.f32 %v1085_v10, 0.0  ;;  %v1088_v14 = vadd.f32 %v2272_v11, %v2078_v4 }
 0x426   :  { %v1100_v16 = vmax.f32 %v1088_v14, 0.0  ;;  %v2273_v17 = vpop.f32.mrb[12].mxu1  ;;  %v1103_v19 = vrot.slane %v1099_v13, 6 }
 0x427   :  { %v2274_v18 = vpop.f32.mrb[13].mxu1 }
 0x428   :  { %v1104_v15 = vrot.slane %v1100_v16, 6  ;;  %v2275_v20 = vadd.f32 %v2274_v18, %v2273_v17  ;;  %v2276_v21 = vpop.f32.mrb[14].mxu1  ;;  %v1117_v22 = vpack.c.bf16 %v1100_v16, %v1099_v13 }
 0x429   :  { %v2277_v23 = vpop.f32.mrb[15].mxu1 }
 0x42a   :  { %v1109_v24 = vsel %vm900_vm6, %v1103_v19, %v1104_v15  ;;  %v1093_v26 = vadd.f32 %v2275_v20, %v2078_v4  ;;  %v2278_v27 = vadd.f32 %v2277_v23, %v2276_v21  ;;  %1286 = vmatprep.mubr.bf16.mxu0 %v1117_v22 }
 0x42c   :  { %v1101_v28 = vmax.f32 %v1093_v26, 0.0  ;;  %v1096_v29 = vadd.f32 %v2278_v27, %v2078_v4 }
 0x42e   :  { %v1105_v30 = vrot.slane %v1101_v28, 6  ;;  %v1102_v31 = vmax.f32 %v1096_v29, 0.0 }
 0x430   :  { %v1106_v32 = vrot.slane %v1102_v31, 6  ;;  %v1118_v33 = vpack.c.bf16 %v1102_v31, %v1101_v28  ;;  %v1108_v35 = vsel %vm900_vm6, %v1104_v15, %v1105_v30 }
 0x432   :  { %v1110_v36 = vsel %vm900_vm6, %v1106_v32, %v1103_v19  ;;  %v1107_v37 = vsel %vm900_vm6, %v1105_v30, %v1106_v32 }
 0x433   :  { %v2119_v39 = vpack.c.bf16 %v1109_v24, %v1110_v36  ;;  %v2122_v40 = vpack.c.bf16 %v1107_v37, %v1108_v35 }
 0x435   :  { %2120 = vmatmul.mubr.msk.bf16.vlgmr.msra.gmra.mrb[12].mxu0 %vm3455_vm8, %v2119_v39 }
 0x436   :  { %1294 = vmatprep.mubr.bf16.mxu0 %v1118_v33  ;;  %2318 = vmatpush3.bf16.msra.mxu0 %v2545_v38 }
 0x437   :  { %2319 = vmatprep.subr.bf16.mxu0 %v2546_v41 }
 0x43a   :  { %2320 = vmatpush3.bf16.msra.mxu0 %v2547_v34 }
 0x43b   :  { %2321 = vmatprep.subr.bf16.mxu0 %v2548_v48 }
 0x43d   :  { %2123 = vmatmul.mubr.msk.bf16.gmra.mrb[16].mxu0 %vm3466_vm10, %v2122_v40 }
 0x43e   :  { %v3484_v43 = vpop.f32.mrb[16].mxu1  ;;  %2322 = vmatpush3.bf16.msra.mxu0 %v2549_v49 }
 0x43f   :  { %v1412_v44 = vpop.f32.mrb[17].mxu1  ;;  %2323 = vmatprep.subr.bf16.mxu0 %v2550_v45  ;;  %v1421_v26 = vadd.f32 %v3484_v43, %v2124_v3 }
 0x440   :  { %v3486_v46 = vpop.f32.mrb[18].mxu1  ;;  %v1413_v7 = vadd.f32 %v2124_v3, %v1412_v44 }
 0x441   :  { %v1415_v47 = vpop.f32.mrb[19].mxu1  ;;  %v1424_v32 = vadd.f32 %v3486_v46, %v2124_v3 }
 0x442   :  { %2324 = vmatpush3.bf16.msra.mxu0 %v2551_v42  ;;  %v1416_v11 = vadd.f32 %v2124_v3, %v1415_v47  ;;  %v2580_v3 = vld [vmem:[%s3573_s17 + $0x20] sm:$0xff]  }
 0x443   :  { %2325 = vmatprep.subr.bf16.mxu0 %v2552_v51 }
 0x446   :  { %2326 = vmatpush3.bf16.msra.mxu0 %v2553_v52  ;;  %v2564_v52 = vld [vmem:[#allocation26 + $0x50] sm:$0xff]  }
 0x447   :  { %2327 = vmatprep.subr.bf16.mxu0 %v2554_v50  ;;  %v2565_v50 = vld [vmem:[#allocation26 + $0x10] sm:$0xff]   ;;  %2349 = vmatprep.subr.bf16.mxu1 %v2564_v52  ;;  %v2174_v52 = vld [vmem:[%s3601_s8] ss:$0 sm:$0xff] }
 0x448   :  { %2350 = vmatpush3.bf16.msra.mxu1 %v2565_v50 }
 0x44a   :  { %2328 = vmatpush3.bf16.msra.mxu0 %v2555_v53  ;;  %v2566_v53 = vld [vmem:[#allocation26 + $0x58] sm:$0xff]  }
 0x44b   :  { %2329 = vmatprep.subr.bf16.mxu0 %v2556_v54  ;;  %v2567_v54 = vld [vmem:[#allocation26 + $0x18] sm:$0xff]   ;;  %2351 = vmatprep.subr.bf16.mxu1 %v2566_v53 }
 0x44c   :  { %2352 = vmatpush3.bf16.msra.mxu1 %v2567_v54 }
 0x44e   :  { %2330 = vmatpush3.bf16.msra.mxu0 %v2557_v55  ;;  %v2568_v55 = vld [vmem:[#allocation26 + $0x60] sm:$0xff]  }
 0x44f   :  { %2331 = vmatprep.subr.bf16.mxu0 %v2558_v56  ;;  %v2569_v56 = vld [vmem:[#allocation26 + $0x20] sm:$0xff]   ;;  %2353 = vmatprep.subr.bf16.mxu1 %v2568_v55 }
 0x450   :  { %2354 = vmatpush3.bf16.msra.mxu1 %v2569_v56 }
 0x452   :  { %2332 = vmatpush3.bf16.msra.mxu0 %v2559_v57  ;;  %v2570_v57 = vld [vmem:[#allocation26 + $0x68] sm:$0xff]  }
 0x453   :  { %2355 = vmatprep.subr.bf16.mxu1 %v2570_v57 }
 0x454   :  { %2356 = vmatpush3.bf16.msra.mxu1 %v2571_v58 }
 0x455   :  { %2357 = vmatprep.subr.bf16.mxu1 %v2572_v25 }
 0x458   :  { %2358 = vmatpush3.bf16.msra.mxu1 %v2573_v59 }
 0x459   :  { %2359 = vmatprep.subr.bf16.mxu1 %v2574_v60 }
 0x45c   :  { %2360 = vmatpush3.bf16.msra.mxu1 %v2575_v61 }
 0x508   :  { %v2295_v62 = vpop.f32.mrb[12].mxu0 }
 0x509   :  { %v2296_v0 = vpop.f32.mrb[13].mxu0 }
 0x50a   :  { %v2297_v1 = vadd.f32 %v2296_v0, %v2295_v62  ;;  %v2298_v2 = vpop.f32.mrb[14].mxu0  ;;  %v2576_v62 = vld [vmem:[%s3573_s17] sm:$0xff]   ;;  %v2577_v0 = vld [vmem:[%s3573_s17 + $0x8] sm:$0xff]  }
 0x50b   :  { %v2299_v4 = vpop.f32.mrb[15].mxu0 }
 0x50c   :  { %v1289_v5 = vadd.f32 %v2297_v1, %v2101_v63  ;;  %v2300_v6 = vadd.f32 %v2299_v4, %v2298_v2  ;;  %v2578_v1 = vld [vmem:[%s3573_s17 + $0x10] sm:$0xff]   ;;  %v2579_v2 = vld [vmem:[%s3573_s17 + $0x18] sm:$0xff]  }
 0x50e   :  { %v1303_v8 = vmax.f32 %v1289_v5, 0.0  ;;  %v1292_v10 = vadd.f32 %v2300_v6, %v2101_v63 }
 0x510   :  { %v1427_v13 = vadd.f32 %v1413_v7, %v1303_v8  ;;  %v1304_v14 = vmax.f32 %v1292_v10, 0.0  ;;  %v2301_v16 = vpop.f32.mrb[16].mxu0  ;;  %v2133_v7 = vld [vmem:[#allocation25] ss:$0 sm:$0xff] }
 0x511   :  { %v2302_v17 = vpop.f32.mrb[17].mxu0 }
 0x512   :  { %v1431_v18 = vmax.f32 %v1427_v13, 0.0  ;;  %v1428_v19 = vadd.f32 %v1416_v11, %v1304_v14  ;;  %v2303_v15 = vadd.f32 %v2302_v17, %v2301_v16  ;;  %v2304_v20 = vpop.f32.mrb[18].mxu0 }
 0x513   :  { %v2305_v21 = vpop.f32.mrb[19].mxu0 }
 0x514   :  { %v1432_v22 = vmax.f32 %v1428_v19, 0.0  ;;  %v1297_v23 = vadd.f32 %v2303_v15, %v2101_v63  ;;  %v2306_v24 = vadd.f32 %v2305_v21, %v2304_v20  ;;  %v1441_v27 = vrot.slane %v1431_v18, 4 }
 0x516   :  { %v1442_v28 = vrot.slane %v1432_v22, 4  ;;  %v1305_v29 = vmax.f32 %v1297_v23, 0.0  ;;  %v1300_v30 = vadd.f32 %v2306_v24, %v2101_v63  ;;  %v1435_v31 = vpack.c.bf16 %v1432_v22, %v1431_v18 }
 0x517   :  { %v3022_v63 = vmov 0.0  }
 0x518   :  { %v1448_v33 = vsel %vm1445_vm11, %v1441_v27, %v1442_v28  ;;  %v1429_v35 = vadd.f32 %v1421_v26, %v1305_v29  ;;  %v1306_v36 = vmax.f32 %v1300_v30, 0.0  ;;  %1627 = vmatprep.mubr.bf16.mxu0 %v1435_v31  ;;  %v1846_v41 = vshrl.u32 %v1435_v31, 16  ;;  %2416 = vmatprep.subr.bf16.mxu0 %v3022_v63 }
 0x51a   :  { %v1433_v37 = vmax.f32 %v1429_v35, 0.0  ;;  %v1430_v38 = vadd.f32 %v1424_v32, %v1306_v36  ;;  %v1848_v48 = vrot.slane %v1846_v41, 7  ;;  %v2582_v35 = vld [vmem:[%s3573_s17 + $0x30] sm:$0xff]   ;;  %v2583_v36 = vld [vmem:[%s3573_s17 + $0x38] sm:$0xff]  }
 0x51c   :  { %v1443_v39 = vrot.slane %v1433_v37, 4  ;;  %v1434_v40 = vmax.f32 %v1430_v38, 0.0  ;;  %v2157_v38 = vld [vmem:[#allocation28] ss:$0 sm:$0xff] }
 0x51e   :  { %v1444_v43 = vrot.slane %v1434_v40, 4  ;;  %v1436_v44 = vpack.c.bf16 %v1434_v40, %v1433_v37  ;;  %v1447_v46 = vsel %vm1445_vm11, %v1442_v28, %v1443_v39 }
 0x520   :  { %v1449_v34 = vsel %vm1445_vm11, %v1444_v43, %v1441_v27  ;;  %v1851_v49 = vrot.slane %v1436_v44, 7  ;;  %v1446_v45 = vsel %vm1445_vm11, %v1443_v39, %v1444_v43 }
 0x521   :  { %v2151_v12 = vpack.c.bf16 %v1448_v33, %v1449_v34  ;;  %v2154_v42 = vpack.c.bf16 %v1446_v45, %v1447_v46  ;;  %v2581_v33 = vld [vmem:[%s3573_s17 + $0x28] sm:$0xff]   ;;  %v3024_v45 = vmov 1966171168  }
 0x522   :  { %v3507_v51 = vsel %vm3496_vm15, %v1848_v48, %v1851_v49 }
 0x523   :  { %2152 = vmatmul.mubr.msk.bf16.vlgmr.msra.gmra.mrb[20].mxu0 %vm2150_vm0, %v2151_v12  ;;  %v1854_v46 = vunpack.c.l.bf16 %v3507_v51  ;;  %v1971_v12 = vunpack.c.l.s4 %v3024_v45 }
 0x524   :  { %1634 = vmatprep.mubr.bf16.mxu0 %v1436_v44  ;;  %2417 = vmatpush3.bf16.msra.mxu0 %v2576_v62 }
 0x525   :  { %2418 = vmatprep.subr.bf16.mxu0 %v3022_v63 }
 0x528   :  { %2419 = vmatpush3.bf16.msra.mxu0 %v2577_v0 }
 0x529   :  { %2420 = vmatprep.subr.bf16.mxu0 %v3022_v63 }
 0x52b   :  { %2155 = vmatmul.mubr.msk.bf16.gmra.mrb[24].mxu0 %vm2153_vm3, %v2154_v42  ;;  %v1972_v42 = vunpack.c.0.s8 %v1971_v12 }
 0x52c   :  { %2421 = vmatpush3.bf16.msra.mxu0 %v2578_v1  ;;  %2432 = vmatprep.mubr.msk.bf16.mxu0 %vm3023_vm2, %v3022_v63 }
 0x52d   :  { %2422 = vmatprep.subr.bf16.mxu0 %v3022_v63  ;;  %v1975_v50 = vsub.s32 %v1972_v42, %v3387_v9 }
 0x530   :  { %2423 = vmatpush3.bf16.msra.mxu0 %v2579_v2 }
 0x531   :  { %2424 = vmatprep.subr.bf16.mxu0 %v3022_v63 }
 0x534   :  { %2425 = vmatpush3.bf16.msra.mxu0 %v2580_v3 }
 0x535   :  { %2426 = vmatprep.subr.bf16.mxu0 %v3022_v63 }
 0x538   :  { %2427 = vmatpush3.bf16.msra.mxu0 %v2581_v33 }
 0x539   :  { %2428 = vmatprep.subr.bf16.mxu0 %v3022_v63 }
 0x53c   :  { %2429 = vmatpush3.bf16.msra.mxu0 %v2582_v35 }
 0x53d   :  { %2430 = vmatprep.subr.bf16.mxu0 %v3022_v63 }
 0x540   :  { %2431 = vmatpush3.bf16.msra.mxu0 %v2583_v36 }
 0x5f6   :  { %v2333_v4 = vpop.f32.mrb[20].mxu0 }
 0x5f7   :  { %v2334_v5 = vpop.f32.mrb[21].mxu0 }
 0x5f8   :  { %v2336_v6 = vpop.f32.mrb[22].mxu0 }
 0x5f9   :  { %v2337_v8 = vpop.f32.mrb[23].mxu0 }
 0x5fa   :  { %v2338_v10 = vadd.f32 %v2337_v8, %v2336_v6 }
 0x5fc   :  { %v1632_v11 = vadd.f32 %v2338_v10, %v2133_v7 }
 0x5fe   :  { %v1642_v13 = vmax.f32 %v1632_v11, 0.0  ;;  %v2339_v14 = vpop.f32.mrb[24].mxu0 }
 0x5ff   :  { %v2340_v16 = vpop.f32.mrb[25].mxu0 }
 0x600   :  { %v1644_v17 = vpack.c.bf16 %v1642_v13, %v1642_v13  ;;  %v2342_v18 = vpop.f32.mrb[26].mxu0 }
 0x601   :  { %v2343_v19 = vpop.f32.mrb[27].mxu0 }
 0x602   :  { %v1646_v15 = vrot.slane %v1644_v17, 2  ;;  %v2344_v20 = vadd.f32 %v2343_v19, %v2342_v18  ;;  %v1651_v22 = vshrl.u32 %v1644_v17, 16 }
 0x604   :  { %v1639_v21 = vadd.f32 %v2344_v20, %v2133_v7  ;;  %v1655_v23 = vshrl.u32 %v1646_v15, 16  ;;  %v1653_v27 = vrot.slane %v1651_v22, 1 }
 0x606   :  { %v1643_v24 = vmax.f32 %v1639_v21, 0.0  ;;  %v1657_v30 = vrot.slane %v1655_v23, 1 }
 0x608   :  { %v1647_v26 = vpack.c.bf16 %v1643_v24, %v1643_v24 }
 0x60a   :  { %v1660_v28 = vrot.slane %v1647_v26, 1  ;;  %v2156_v29 = vrot.slane %v1647_v26, 3 }
 0x60c   :  { %v1668_v31 = vsel %vm3496_vm15, %v1657_v30, %v2156_v29  ;;  %v1667_v32 = vsel %vm3496_vm15, %v1653_v27, %v1660_v28 }
 0x60d   :  { %1836 = vmatprep.mubr.bf16.mxu1 %v1668_v31 }
 0x60e   :  { %1837 = vmatmul.mubr.bf16.vlgmr.msra.gmra.mrb[20].mxu1 %v1667_v32 }
 0x6e1   :  { %v2361_v37 = vpop.f32.mrb[20].mxu1 }
 0x6e2   :  { %v2362_v39 = vpop.f32.mrb[21].mxu1 }
 0x6e3   :  { %v2363_v40 = vadd.f32 %v2362_v39, %v2361_v37  ;;  %v2364_v41 = vpop.f32.mrb[22].mxu1 }
 0x6e4   :  { %v2365_v43 = vpop.f32.mrb[23].mxu1 }
 0x6e5   :  { %v1839_v44 = vadd.f32 %v2363_v40, %v2157_v38 }
 0x6e7   :  { %v1844_v47 = vmax.f32 %v1839_v44, 0.0 }
 0x6e9   :  { %v1855_v34 = vadd.f32 %v1854_v46, %v1844_v47 }
 0x6eb   :  { %v1856_v48 = vmax.f32 %v1855_v34, 0.0 }
 0x6ed   :  { %v1857_v49 = vpack.c.bf16 %v1856_v48, %v1856_v48 }
 0x6ef   :  { %2433 = vmatmul.mubr.bf16.vlgmr.msra.gmra.mrb[28].mxu0 %v1857_v49 }
 0x7c2   :  { %v1963_v53 = vpop.f32.mrb[28].mxu0 }
 0x7c3   :  { %v1964_v54 = vadd.f32 %v2174_v52, %v1963_v53  ;;  %v2434_v55 = vpop.f32.mrb[29].mxu0 }
 0x7c4   :  { %v1966_v56 = vpop.f32.mrb[30].mxu0 }
 0x7c5   :  { %v1976_v51 = vrot.slane %v1964_v54, %v1975_v50  ;;  %v2435_v57 = vpop.f32.mrb[31].mxu0 }
 0x7c7   :  { %v1977_v58 = vcombine.high %v1976_v51, %v1976_v51  ;;  %2183 = vst.sshfl [vmem:[#allocation29] sm:$0x1 pattern:$0x73625140] %v1976_v51 }
 0x7c9   :  { %2184 = vst.sshfl [vmem:[#allocation29 + $0x1] sm:$0x1 pattern:$0x73625140] %v1977_v58 }
 0x7ca   :  { %2971 = shalt.err (!%p2968_p0)
}
 0x7cb   :  { %s3602_s9 = sld [smem:[#allocation45_spill]] }
 0x7d1   :  { %s2972_s27 = scalar_lea.hbm %s3602_s9, 32 }
 0x7d2   :  { %p2973_p1 = scmp.ne.s32.totalorder %s3602_s9, %s2972_s27  ;;  %p2976_p2 = scmp.lt.u32.totalorder %s2972_s27, %s3602_s9 }
 0x7d4   :  { %p2978_p3 = pnand %p2976_p2, %p2973_p1 }
 0x7d6   :  { %2981 = shalt.err (!%p2978_p3)
}
 0x7d7   :  { %s3026_s24 = smov 16   ;;  %s3027_s16 = smov 1  }
 0x7d8   :  { %2007 = dma.vmem_to_hbm [thread:$0]  %s2002_s23, 32, %s3602_s9, [#allocation4], %s3026_s24, %s3026_s24, %s3027_s16  }
 0x7d9   :  { %3000 = dma.done.wait [#allocation4], 32  }
 0x7da   :  { %3001 = vsyncadd [#allocation4], 4294967264 }
 0x7db   :  { %2011 = vsyncpa [#allocation3], 1 }
 0x7dc   :  { %2012 = vsyncpa [#allocation6], 1 }
 0x7dd   :  { %2013 = vsyncpa [#allocation9], 1 }
 0x7de   :  { %2014 = vsyncpa [#allocation12], 1 }
 0x7df   :  { %2015 = vsyncpa [#allocation15], 1 }
 0x7e0   :  { %2016 = vsyncpa [#allocation18], 1 }
 0x7e1   :  { %2017 = vsyncpa [#allocation21], 1 }
 0x7e2   :  { %2018 = vsyncpa [#allocation24], 1 }
 0x7e3   :  { %2019 = vsyncpa [#allocation27], 1 }
 0x7e4   :  { %2020 = vsyncpa [#allocation4], 1 }

</bundles_post_ra>
